<compile_context>
chip_gen: v7x
topology: tpu7x:2x2x1
jax: 0.10.0
libtpu: 0.0.40
codegen_flags: <defaults>
</compile_context>

<pallas_src>
import math

import jax
import jax.numpy as jnp
from jax import lax
from jax.experimental import pallas as pl
from jax.experimental.pallas import tpu as pltpu


_BIG = 1e30        # penalty added to the bias channel of invalid / padded points
_BIG_HALF = 5e29   # threshold used to recover validity masks inside the kernel
_MIN_INIT = 3e38   # running-min initializer (finite, > any biased distance)
# NOTE: when one side of a pair is entirely invalid, sum1/sum2 transiently accumulate
# ~N*_BIG (~1e33-1e35) before the host-side (cnt1>0)&(cnt2>0) guard zeroes them; that
# is still 3-5 decades below f32 overflow — do not raise _BIG without rechecking.


# --------------------------------------------------------------------------- #
# Pallas kernel: one (TM x TN) tile of the biased pairwise distance matrix.    #
# --------------------------------------------------------------------------- #
def _chamfer_kernel(p_ref, qt_ref, sum1_ref, sum2_ref, rowmin_sc, colmin_sc):
    r = pl.program_id(1)           # row (output-point) tile
    c = pl.program_id(2)           # col (target-point) tile
    nr = pl.num_programs(1)
    nc = pl.num_programs(2)

    p = p_ref[0]                   # (TM, 8)  augmented output points
    qt = qt_ref[0]                 # (8, TN)  augmented target points (channel-major)

    # Single MXU pass: ||p||^2 + ||q||^2 - 2 p.q + BIG*(1-mo) + BIG*(1-mt).
    # Precision pinned: default precision may demote f32 operands to one bf16 pass,
    # injecting O(||p||^2 * 2^-8) absolute error into the squared distances.
    d = jnp.dot(p, qt, preferred_element_type=jnp.float32,
                precision=lax.Precision.HIGHEST)

    @pl.when(jnp.logical_and(r == 0, c == 0))
    def _init_outputs():
        sum1_ref[...] = jnp.zeros_like(sum1_ref)
        sum2_ref[...] = jnp.zeros_like(sum2_ref)

    # ---- dist1: per output point, running min across target (column) tiles ----
    # ReLU hoisted onto the reduced vector: min_j max(D,0) == max(min_j D, 0).
    row_tile_min = jnp.maximum(jnp.min(d, axis=1, keepdims=True), 0.0)     # (TM, 1)
    prev_row = jnp.where(c == 0, _MIN_INIT, rowmin_sc[...])
    new_row = jnp.minimum(prev_row, row_tile_min)
    rowmin_sc[...] = new_row

    @pl.when(c == nc - 1)
    def _finish_rows():
        mo = (p[:, 4:5] < _BIG_HALF).astype(jnp.float32)                   # (TM, 1)
        sum1_ref[...] += jnp.sum(new_row * mo).reshape(1, 1, 1)

    # ---- dist2: per target point, running min across output (row) tiles ----
    col_tile_min = jnp.maximum(jnp.min(d, axis=0, keepdims=True), 0.0)     # (1, TN)
    prev_col = jnp.where(r == 0, _MIN_INIT, colmin_sc[c])
    new_col = jnp.minimum(prev_col, col_tile_min)
    colmin_sc[c] = new_col

    @pl.when(r == nr - 1)
    def _finish_cols():
        mt = (qt[3:4, :] < _BIG_HALF).astype(jnp.float32)                  # (1, TN)
        sum2_ref[...] += jnp.sum(new_col * mt).reshape(1, 1, 1)


# --------------------------------------------------------------------------- #
# Host-side helpers                                                            #
# --------------------------------------------------------------------------- #
def _round_up(x, m):
    return ((x + m - 1) // m) * m


def _pick_tile(n, max_tile):
    """Largest useful 128-multiple tile <= ~max_tile minimizing padding of n."""
    n128 = _round_up(max(n, 1), 128)
    n_tiles = -(-n128 // max_tile)                   # ceil
    tile = _round_up(-(-n128 // n_tiles), 128)
    return tile, tile * n_tiles


def _pad_last(a, npad, value):
    n = a.shape[-1]
    if npad > n:
        a = jnp.pad(a, [(0, 0)] * (a.ndim - 1) + [(0, npad - n)],
                    constant_values=value)
    return a


def _augment_rows(pts, mask, npad):
    """(G,N,3),(G,N) -> (G,npad,8): [x, y, z, 1, ||p||^2 + BIG*(1-m), 0, 0, 0]."""
    pts = pts * mask[..., None]                      # zero invalid coords
    bias = jnp.sum(pts * pts, axis=-1) + _BIG * (1.0 - mask)
    x, y, z = pts[..., 0], pts[..., 1], pts[..., 2]
    ones = jnp.ones_like(bias)
    zeros = jnp.zeros_like(bias)
    chans = [x, y, z, ones, bias, zeros, zeros, zeros]
    pads = [0.0, 0.0, 0.0, 0.0, _BIG, 0.0, 0.0, 0.0]
    chans = [_pad_last(ch, npad, pv) for ch, pv in zip(chans, pads)]
    return jnp.stack(chans, axis=-1)


def _augment_cols_t(pts, mask, npad):
    """(G,N,3),(G,N) -> (G,8,npad) channel-major (no host transpose relayout):
       [-2x, -2y, -2z, ||q||^2 + BIG*(1-m), 1, 0, 0, 0]."""
    pts = pts * mask[..., None]
    bias = jnp.sum(pts * pts, axis=-1) + _BIG * (1.0 - mask)
    x, y, z = pts[..., 0], pts[..., 1], pts[..., 2]
    ones = jnp.ones_like(bias)
    zeros = jnp.zeros_like(bias)
    chans = [-2.0 * x, -2.0 * y, -2.0 * z, bias, ones, zeros, zeros, zeros]
    pads = [0.0, 0.0, 0.0, _BIG, 0.0, 0.0, 0.0, 0.0]
    chans = [_pad_last(ch, npad, pv) for ch, pv in zip(chans, pads)]
    return jnp.stack(chans, axis=1)


def chamfer_pallas(out_pts, out_mask, tgt_pts, tgt_mask, *, max_tm=1024, max_tn=2048):
    """Masked symmetric Chamfer distance.

    out_pts/tgt_pts: [B, S, N, 3] f32 xyz; out_mask/tgt_mask: [B, S, N] f32 in {0,1}.
    Returns the per-(future step, batch) Chamfer distance tensor of shape (S, B).
    """
    B, S, N, _ = out_pts.shape
    G = B * S

    # Rectangular tiles: the f32 (TM,TN) distance tile is the only large VMEM consumer
    # (8 MiB at 1024x2048); inputs are just tile*8*4 B. Wide TN reduces column sweeps,
    # qt re-fetches and lane-sparse (TM,1) rowmin scratch updates.
    tm, npad_r = _pick_tile(N, max_tm)
    tn, npad_c = _pick_tile(N, max_tn)
    n_r = npad_r // tm
    n_c = npad_c // tn

    p_aug = _augment_rows(out_pts.reshape(G, N, 3), out_mask.reshape(G, N), npad_r)
    q_aug_t = _augment_cols_t(tgt_pts.reshape(G, N, 3), tgt_mask.reshape(G, N), npad_c)

    f = pl.pallas_call(
        _chamfer_kernel,
        out_shape=(jax.ShapeDtypeStruct((G, 1, 1), jnp.float32),
                   jax.ShapeDtypeStruct((G, 1, 1), jnp.float32)),
        grid_spec=pltpu.PrefetchScalarGridSpec(
            num_scalar_prefetch=0,
            grid=(G, n_r, n_c),
            in_specs=[
                pl.BlockSpec((1, tm, 8), lambda g, r, c: (g, r, 0)),
                pl.BlockSpec((1, 8, tn), lambda g, r, c: (g, 0, c)),
            ],
            out_specs=(
                pl.BlockSpec((1, 1, 1), lambda g, r, c: (g, 0, 0)),
                pl.BlockSpec((1, 1, 1), lambda g, r, c: (g, 0, 0)),
            ),
            scratch_shapes=[
                pltpu.VMEM((tm, 1), jnp.float32),        # running row-min (dist1)
                pltpu.VMEM((n_c, 1, tn), jnp.float32),   # running col-min per col tile (dist2)
            ],
        ),
        compiler_params=pltpu.CompilerParams(
            # Only G is parallel (v7x megacore shards the batch; keep G=B*S>=2).
            # r/c must stay "arbitrary": resident output accumulators + running-min
            # scratches depend on sequential sweep order with c innermost.
            dimension_semantics=("parallel", "arbitrary", "arbitrary"),
            # 48 MiB fits the 8 MiB d-tile + compiler scratch with headroom and stays
            # below v7x's 64 MiB physical VMEM (v5e/v6e have 128 MiB).
            vmem_limit_bytes=48 * 1024 * 1024,
        ),
    )
    sum1, sum2 = f(p_aug, q_aug_t)

    sum1 = sum1.reshape(B, S)
    sum2 = sum2.reshape(B, S)
    cnt1 = jnp.sum(out_mask, axis=-1)
    cnt2 = jnp.sum(tgt_mask, axis=-1)
    # Guard the degenerate empty-point-cloud case (the torch reference would index an
    # empty tensor); report 0 for such (s, b) pairs instead of exploding to ~1e30.
    cd = jnp.where((cnt1 > 0.0) & (cnt2 > 0.0),
                   sum1 / jnp.maximum(cnt1, 1.0) + sum2 / jnp.maximum(cnt2, 1.0),
                   0.0)
    return jnp.transpose(cd)                                                # (S, B)


# --------------------------------------------------------------------------- #
# Dense pure-JAX reference (direct squared differences) for validation.        #
# --------------------------------------------------------------------------- #
def chamfer_reference(out_pts, out_mask, tgt_pts, tgt_mask):
    B, S, N, _ = out_pts.shape
    rows = []
    for s in range(S):
        cols = []
        for b in range(B):
            p, q = out_pts[b, s], tgt_pts[b, s]
            mo, mt = out_mask[b, s], tgt_mask[b, s]
            d = jnp.sum((p[:, None, :] - q[None, :, :]) ** 2, axis=-1)      # (N, N)
            d1 = jnp.min(d + _BIG * (1.0 - mt)[None, :], axis=1)
            d2 = jnp.min(d + _BIG * (1.0 - mo)[:, None], axis=0)
            c1, c2 = jnp.sum(mo), jnp.sum(mt)
            v = jnp.where((c1 > 0) & (c2 > 0),
                          jnp.sum(d1 * mo) / jnp.maximum(c1, 1.0)
                          + jnp.sum(d2 * mt) / jnp.maximum(c2, 1.0), 0.0)
            cols.append(v)
        rows.append(jnp.stack(cols))
    return jnp.stack(rows)                                                  # (S, B)


# --------------------------------------------------------------------------- #
# Deterministic stand-in for pcf's `projection` helper (range view -> points). #
# --------------------------------------------------------------------------- #
class Projection:
    def __init__(self, H, W, fov_up_deg=3.0, fov_down_deg=-25.0):
        self.H, self.W = H, W
        fov_up = math.radians(fov_up_deg)
        fov_down = math.radians(fov_down_deg)
        fov = fov_up - fov_down
        h = (jnp.arange(H, dtype=jnp.float32) + 0.5) / H
        w = (jnp.arange(W, dtype=jnp.float32) + 0.5) / W
        pitch = fov_up - h * fov                       # (H,)
        yaw = math.pi * (1.0 - 2.0 * w)                # (W,)
        yy, pp = jnp.meshgrid(yaw, pitch)              # (H, W)
        self.dirs = jnp.stack(
            [jnp.cos(pp) * jnp.cos(yy),
             jnp.cos(pp) * jnp.sin(yy),
             jnp.sin(pp)], axis=-1)                    # (H, W, 3) unit ray dirs

    def get_masked_range_view(self, output):
        rv = output["rv"]                              # [B, S, H, W]
        keep = jax.nn.sigmoid(output["mask_logits"]) > 0.5
        return jnp.where(keep & (rv > 0.0), rv, -1.0)

    def range_view_to_points(self, rv):
        """rv: [..., H, W] -> (points [..., H, W, 3], valid mask [..., H, W])."""
        pts = rv[..., None] * self.dirs
        return pts, rv > 0.0


# --------------------------------------------------------------------------- #
# Forward pass matching chamfer_distance.forward                               #
# --------------------------------------------------------------------------- #
def chamfer_distance_forward(output, target, n_samples, proj):
    # TODO(synk): n_samples != -1 uses python random.sample in the reference; only the
    # full masked-point path (n_samples == -1) is implemented here.
    rv = output["rv"]
    B, S, H, W = rv.shape
    N = H * W

    masked = proj.get_masked_range_view(output)                    # [B,S,H,W]
    out_pts, out_valid = proj.range_view_to_points(masked)         # [B,S,H,W,3]
    out_pts = out_pts.reshape(B, S, N, 3)
    out_mask = out_valid.reshape(B, S, N).astype(jnp.float32)

    tgt_xyz = jnp.transpose(target[:, 1:4], (0, 2, 3, 4, 1)).reshape(B, S, N, 3)
    tgt_mask = (target[:, 0] > 0.0).reshape(B, S, N).astype(jnp.float32)

    cd_tensor = chamfer_pallas(out_pts, out_mask, tgt_xyz, tgt_mask)   # (S, B)
    chamfer_distances = {s: jnp.mean(cd_tensor[s]) for s in range(S)}
    return chamfer_distances, cd_tensor


if __name__ == "__main__":
    key = jax.random.PRNGKey(0)
    # First case: single-tile path (N = 256). Second: exercises multi-row-tile
    # residency (N = 1536) plus a small-tile re-run covering the multi-column-tile
    # (running row-min across c) path.
    for (B, S, H, W) in [(2, 2, 16, 16), (2, 2, 32, 48)]:
        key, k1, k2, k3 = jax.random.split(key, 4)

        rv = jax.random.uniform(k1, (B, S, H, W), jnp.float32, minval=-2.0, maxval=50.0)
        mask_logits = jax.random.normal(k2, (B, S, H, W), dtype=jnp.float32)
        output = {"rv": rv, "mask_logits": mask_logits}

        proj = Projection(H, W)

        tgt_rv = jax.random.uniform(k3, (B, S, H, W), jnp.float32, minval=-2.0, maxval=50.0)
        tgt_pts_hw, _ = proj.range_view_to_points(tgt_rv)          # [B,S,H,W,3]
        tgt_ch = jnp.transpose(tgt_pts_hw, (0, 4, 1, 2, 3))        # [B,3,S,H,W]
        target = jnp.concatenate([tgt_rv[:, None], tgt_ch], axis=1)    # [B,4,S,H,W]

        cd_dict, cd_tensor = chamfer_distance_forward(output, target, n_samples=-1, proj=proj)
        cd_tensor = jax.block_until_ready(cd_tensor)
        assert cd_tensor.shape == (S, B) and cd_tensor.dtype == jnp.float32
        assert bool(jnp.all(jnp.isfinite(cd_tensor)))
        assert bool(jnp.all(cd_tensor >= 0.0))

        # Independent dense reference check.
        N = H * W
        masked = proj.get_masked_range_view(output)
        o_pts, o_valid = proj.range_view_to_points(masked)
        o_pts = o_pts.reshape(B, S, N, 3)
        o_mask = o_valid.reshape(B, S, N).astype(jnp.float32)
        t_pts = jnp.transpose(target[:, 1:4], (0, 2, 3, 4, 1)).reshape(B, S, N, 3)
        t_mask = (target[:, 0] > 0.0).reshape(B, S, N).astype(jnp.float32)
        ref = jax.block_until_ready(chamfer_reference(o_pts, o_mask, t_pts, t_mask))
        tol = 2e-2 + 2e-3 * float(jnp.max(jnp.abs(ref)))
        err = float(jnp.max(jnp.abs(cd_tensor - ref)))
        assert err <= tol, f"mismatch vs reference: err={err} tol={tol}"

        if N > 512:
            # Force small square tiles to exercise the multi-column-tile flash path.
            small = chamfer_pallas(o_pts, o_mask, t_pts, t_mask, max_tm=256, max_tn=256)
            small = jax.block_until_ready(small)
            err_s = float(jnp.max(jnp.abs(small - ref)))
            assert err_s <= tol, f"small-tile mismatch: err={err_s} tol={tol}"

    print("KERNEL_OK")
</pallas_src>

<mosaic_0001>
module attributes {stable_mosaic.version = 11 : i64} {
  func.func @_chamfer_kernel(%arg0: i32, %arg1: i32, %arg2: i32, %arg3: memref<1x256x8xf32, #tpu.memory_space<vmem>>, %arg4: memref<1x8x256xf32, #tpu.memory_space<vmem>>, %arg5: memref<1x1x1xf32, #tpu.memory_space<vmem>>, %arg6: memref<1x1x1xf32, #tpu.memory_space<vmem>>, %arg7: memref<256x1xf32, #tpu.memory_space<vmem>>, %arg8: memref<1x1x256xf32, #tpu.memory_space<vmem>>) attributes {dimension_semantics = [#tpu.dimension_semantics<parallel>, #tpu.dimension_semantics<arbitrary>, #tpu.dimension_semantics<arbitrary>], iteration_bounds = array<i64: 4, 1, 1>, scalar_prefetch = 0 : i64, scratch_operands = 2 : i64, tpu.core_type = #tpu.core_type<tc>, window_params = [{transform_indices = @transform_0, window_bounds = array<i64: 1, 256, 8>}, {transform_indices = @transform_1, window_bounds = array<i64: 1, 8, 256>}, {transform_indices = @transform_2, window_bounds = array<i64: 1, 1, 1>}, {transform_indices = @transform_3, window_bounds = array<i64: 1, 1, 1>}]} {
    %c0 = arith.constant 0 : index
    %c0_0 = arith.constant 0 : index
    %c0_1 = arith.constant 0 : index
    %0 = vector.load %arg3[%c0, %c0_0, %c0_1] : memref<1x256x8xf32, #tpu.memory_space<vmem>>, vector<1x256x8xf32>
    %1 = vector.shape_cast %0 : vector<1x256x8xf32> to vector<256x8xf32>
    %c0_2 = arith.constant 0 : index
    %c0_3 = arith.constant 0 : index
    %c0_4 = arith.constant 0 : index
    %2 = vector.load %arg4[%c0_2, %c0_3, %c0_4] : memref<1x8x256xf32, #tpu.memory_space<vmem>>, vector<1x8x256xf32>
    %3 = vector.shape_cast %2 : vector<1x8x256xf32> to vector<8x256xf32>
    %cst = arith.constant dense<0.000000e+00> : vector<256x256xf32>
    %4 = tpu.matmul %1, %3, %cst {dimension_numbers = #tpu.dot_dimension_numbers<[1], [0], [0], [1], [0, 0, 1, 1], [], []>, precision = #tpu.contract_precision<fp32>} : vector<256x8xf32>, vector<8x256xf32>, vector<256x256xf32> -> vector<256x256xf32>
    %c0_i32 = arith.constant 0 : i32
    %5 = arith.cmpi eq, %arg1, %c0_i32 : i32
    %c0_i32_5 = arith.constant 0 : i32
    %6 = arith.cmpi eq, %arg2, %c0_i32_5 : i32
    %7 = arith.andi %5, %6 : i1
    %8 = arith.extui %7 : i1 to i32
    %c0_i32_6 = arith.constant 0 : i32
    %9 = arith.cmpi ne, %8, %c0_i32_6 : i32
    scf.if %9 {
      %cst_27 = arith.constant 0.000000e+00 : f32
      %41 = vector.broadcast %cst_27 : f32 to vector<1x1x1xf32>
      %c0_28 = arith.constant 0 : index
      %c0_29 = arith.constant 0 : index
      %c0_30 = arith.constant 0 : index
      %42 = vector.load %arg5[%c0_28, %c0_29, %c0_30] : memref<1x1x1xf32, #tpu.memory_space<vmem>>, vector<1x1x1xf32>
      tpu.vector_store %arg5[%c0_28, %c0_29, %c0_30], %41 {strides = array<i32>} : memref<1x1x1xf32, #tpu.memory_space<vmem>>, vector<1x1x1xf32>,
      %cst_31 = arith.constant 0.000000e+00 : f32
      %43 = vector.broadcast %cst_31 : f32 to vector<1x1x1xf32>
      %c0_32 = arith.constant 0 : index
      %c0_33 = arith.constant 0 : index
      %c0_34 = arith.constant 0 : index
      %44 = vector.load %arg6[%c0_32, %c0_33, %c0_34] : memref<1x1x1xf32, #tpu.memory_space<vmem>>, vector<1x1x1xf32>
      tpu.vector_store %arg6[%c0_32, %c0_33, %c0_34], %43 {strides = array<i32>} : memref<1x1x1xf32, #tpu.memory_space<vmem>>, vector<1x1x1xf32>,
    } else {
    }
    %cst_7 = arith.constant dense<0x7F800000> : vector<256xf32>
    %10 = vector.multi_reduction <minimumf>, %4, %cst_7 [1] : vector<256x256xf32> to vector<256xf32>
    %11 = vector.shape_cast %10 : vector<256xf32> to vector<256x1xf32>
    %cst_8 = arith.constant 0.000000e+00 : f32
    %12 = vector.broadcast %cst_8 : f32 to vector<256x1xf32>
    %13 = arith.maximumf %11, %12 : vector<256x1xf32>
    %c0_i32_9 = arith.constant 0 : i32
    %14 = arith.cmpi eq, %arg2, %c0_i32_9 : i32
    %c0_10 = arith.constant 0 : index
    %c0_11 = arith.constant 0 : index
    %15 = vector.load %arg7[%c0_10, %c0_11] : memref<256x1xf32, #tpu.memory_space<vmem>>, vector<256x1xf32>
    %cst_12 = arith.constant 3.000000e+38 : f32
    %16 = vector.broadcast %cst_12 : f32 to vector<256x1xf32>
    %17 = arith.select %14, %16, %15 : vector<256x1xf32>
    %18 = arith.minimumf %17, %13 : vector<256x1xf32>
    %c0_13 = arith.constant 0 : index
    %c0_14 = arith.constant 0 : index
    %19 = vector.load %arg7[%c0_13, %c0_14] : memref<256x1xf32, #tpu.memory_space<vmem>>, vector<256x1xf32>
    tpu.vector_store %arg7[%c0_13, %c0_14], %18 {strides = array<i32>} : memref<256x1xf32, #tpu.memory_space<vmem>>, vector<256x1xf32>,
    %c0_i32_15 = arith.constant 0 : i32
    %20 = arith.cmpi eq, %arg2, %c0_i32_15 : i32
    %21 = arith.extui %20 : i1 to i32
    %c0_i32_16 = arith.constant 0 : i32
    %22 = arith.cmpi ne, %21, %c0_i32_16 : i32
    scf.if %22 {
      %41 = vector.extract_strided_slice %1 {offsets = [0, 4], sizes = [256, 1], strides = [1, 1]} : vector<256x8xf32> to vector<256x1xf32>
      %cst_27 = arith.constant 5.000000e+29 : f32
      %42 = vector.broadcast %cst_27 : f32 to vector<256x1xf32>
      %43 = arith.cmpf olt, %41, %42 : vector<256x1xf32>
      %44 = arith.extui %43 : vector<256x1xi1> to vector<256x1xi32>
      %45 = arith.sitofp %44 : vector<256x1xi32> to vector<256x1xf32>
      %c0_28 = arith.constant 0 : index
      %c0_29 = arith.constant 0 : index
      %c0_30 = arith.constant 0 : index
      %46 = vector.load %arg5[%c0_28, %c0_29, %c0_30] : memref<1x1x1xf32, #tpu.memory_space<vmem>>, vector<1x1x1xf32>
      %47 = arith.mulf %18, %45 : vector<256x1xf32>
      %48 = vector.shape_cast %47 : vector<256x1xf32> to vector<1x256x1xf32>
      %cst_31 = arith.constant dense<0.000000e+00> : vector<1xf32>
      %49 = vector.multi_reduction <add>, %48, %cst_31 [1, 2] : vector<1x256x1xf32> to vector<1xf32>
      %50 = vector.shape_cast %49 : vector<1xf32> to vector<1x1x1xf32>
      %51 = vector.extract %50[0, 0, 0] : f32 from vector<1x1x1xf32>
      %52 = vector.broadcast %51 : f32 to vector<1x1x1xf32>
      %53 = arith.addf %46, %52 : vector<1x1x1xf32>
      %c0_32 = arith.constant 0 : index
      %c0_33 = arith.constant 0 : index
      %c0_34 = arith.constant 0 : index
      %54 = vector.load %arg5[%c0_32, %c0_33, %c0_34] : memref<1x1x1xf32, #tpu.memory_space<vmem>>, vector<1x1x1xf32>
      tpu.vector_store %arg5[%c0_32, %c0_33, %c0_34], %53 {strides = array<i32>} : memref<1x1x1xf32, #tpu.memory_space<vmem>>, vector<1x1x1xf32>,
    } else {
    }
    %cst_17 = arith.constant dense<0x7F800000> : vector<256xf32>
    %23 = vector.multi_reduction <minimumf>, %4, %cst_17 [0] : vector<256x256xf32> to vector<256xf32>
    %24 = vector.shape_cast %23 : vector<256xf32> to vector<1x256xf32>
    %cst_18 = arith.constant 0.000000e+00 : f32
    %25 = vector.broadcast %cst_18 : f32 to vector<1x256xf32>
    %26 = arith.maximumf %24, %25 : vector<1x256xf32>
    %c0_i32_19 = arith.constant 0 : i32
    %27 = arith.cmpi eq, %arg1, %c0_i32_19 : i32
    %28 = arith.index_cast %arg2 : i32 to index
    %c0_20 = arith.constant 0 : index
    %c0_21 = arith.constant 0 : index
    %29 = vector.load %arg8[%28, %c0_20, %c0_21] : memref<1x1x256xf32, #tpu.memory_space<vmem>>, vector<1x1x256xf32>
    %30 = vector.shape_cast %29 : vector<1x1x256xf32> to vector<1x256xf32>
    %cst_22 = arith.constant 3.000000e+38 : f32
    %31 = vector.broadcast %cst_22 : f32 to vector<1x256xf32>
    %32 = arith.select %27, %31, %30 : vector<1x256xf32>
    %33 = arith.minimumf %32, %26 : vector<1x256xf32>
    %34 = arith.index_cast %arg2 : i32 to index
    %c0_23 = arith.constant 0 : index
    %c0_24 = arith.constant 0 : index
    %35 = vector.load %arg8[%34, %c0_23, %c0_24] : memref<1x1x256xf32, #tpu.memory_space<vmem>>, vector<1x1x256xf32>
    %36 = vector.shape_cast %35 : vector<1x1x256xf32> to vector<1x256xf32>
    %37 = vector.shape_cast %33 : vector<1x256xf32> to vector<1x1x256xf32>
    tpu.vector_store %arg8[%34, %c0_23, %c0_24], %37 {strides = array<i32>} : memref<1x1x256xf32, #tpu.memory_space<vmem>>, vector<1x1x256xf32>,
    %c0_i32_25 = arith.constant 0 : i32
    %38 = arith.cmpi eq, %arg1, %c0_i32_25 : i32
    %39 = arith.extui %38 : i1 to i32
    %c0_i32_26 = arith.constant 0 : i32
    %40 = arith.cmpi ne, %39, %c0_i32_26 : i32
    scf.if %40 {
      %41 = vector.extract_strided_slice %3 {offsets = [3, 0], sizes = [1, 256], strides = [1, 1]} : vector<8x256xf32> to vector<1x256xf32>
      %cst_27 = arith.constant 5.000000e+29 : f32
      %42 = vector.broadcast %cst_27 : f32 to vector<1x256xf32>
      %43 = arith.cmpf olt, %41, %42 : vector<1x256xf32>
      %44 = arith.extui %43 : vector<1x256xi1> to vector<1x256xi32>
      %45 = arith.sitofp %44 : vector<1x256xi32> to vector<1x256xf32>
      %c0_28 = arith.constant 0 : index
      %c0_29 = arith.constant 0 : index
      %c0_30 = arith.constant 0 : index
      %46 = vector.load %arg6[%c0_28, %c0_29, %c0_30] : memref<1x1x1xf32, #tpu.memory_space<vmem>>, vector<1x1x1xf32>
      %47 = arith.mulf %33, %45 : vector<1x256xf32>
      %48 = vector.shape_cast %47 : vector<1x256xf32> to vector<1x1x256xf32>
      %cst_31 = arith.constant dense<0.000000e+00> : vector<1xf32>
      %49 = vector.multi_reduction <add>, %48, %cst_31 [1, 2] : vector<1x1x256xf32> to vector<1xf32>
      %50 = vector.shape_cast %49 : vector<1xf32> to vector<1x1x1xf32>
      %51 = vector.extract %50[0, 0, 0] : f32 from vector<1x1x1xf32>
      %52 = vector.broadcast %51 : f32 to vector<1x1x1xf32>
      %53 = arith.addf %46, %52 : vector<1x1x1xf32>
      %c0_32 = arith.constant 0 : index
      %c0_33 = arith.constant 0 : index
      %c0_34 = arith.constant 0 : index
      %54 = vector.load %arg6[%c0_32, %c0_33, %c0_34] : memref<1x1x1xf32, #tpu.memory_space<vmem>>, vector<1x1x1xf32>
      tpu.vector_store %arg6[%c0_32, %c0_33, %c0_34], %53 {strides = array<i32>} : memref<1x1x1xf32, #tpu.memory_space<vmem>>, vector<1x1x1xf32>,
    } else {
    }
    return
  }
  func.func @transform_0(%arg0: i32, %arg1: i32, %arg2: i32) -> (i32, i32, i32) {
    %c0_i32 = arith.constant 0 : i32
    %c0_i32_0 = arith.constant 0 : i32
    return %arg0, %arg1, %c0_i32 : i32, i32, i32
  }
  func.func @transform_1(%arg0: i32, %arg1: i32, %arg2: i32) -> (i32, i32, i32) {
    %c0_i32 = arith.constant 0 : i32
    %c0_i32_0 = arith.constant 0 : i32
    return %arg0, %c0_i32, %arg2 : i32, i32, i32
  }
  func.func @transform_2(%arg0: i32, %arg1: i32, %arg2: i32) -> (i32, i32, i32) {
    %c0_i32 = arith.constant 0 : i32
    %c0_i32_0 = arith.constant 0 : i32
    %c0_i32_1 = arith.constant 0 : i32
    return %arg0, %c0_i32, %c0_i32_0 : i32, i32, i32
  }
  func.func @transform_3(%arg0: i32, %arg1: i32, %arg2: i32) -> (i32, i32, i32) {
    %c0_i32 = arith.constant 0 : i32
    %c0_i32_0 = arith.constant 0 : i32
    %c0_i32_1 = arith.constant 0 : i32
    return %arg0, %c0_i32, %c0_i32_0 : i32, i32, i32
  }
}

</mosaic_0001>

<bundles_post_ra>
// kernel: tpu_custom_call.1
= control target key start
LH: loop header
LB: loop body
LE: loop exit
PB: predicated region body
PF: predicated region fallthrough
CT: control target
= control target key end

     0   :  { %s3753_s12 = smov 0   ;;  %s3755_s13 = smov 0   ;;  %s4695_s0 = inlined_call_operand.vmem [shape: f32[4,256,8], index: 0, kind: input, shape index: {}]   ;;  %s4696_s1 = inlined_call_operand.vmem [shape: f32[4,8,256], index: 1, kind: input, shape index: {}]   ;;  %s4697_s2 = inlined_call_operand.vmem [shape: f32[4,1,1], index: 2, kind: output, shape index: {0}]   ;;  %s4698_s3 = inlined_call_operand.vmem [shape: f32[4,1,1], index: 3, kind: output, shape index: {1}]  }
   0x1   :  { %s3757_s14 = smov 0  }
   0x2 LB: > { %s33_s15 = sadd.s32 1, %s3724_s13  ;;  %p3246_p0 = scmp.ge.s32.totalorder %s3728_s14, 1  ;;  %s3728_s14 = sphi %s3757_s14, %s14_s14   ;;  %s3724_s13 = sphi %s3755_s13, %s4811_s13   ;;  %s3720_s12 = sphi %s3753_s12, %s4810_s12  }
   0x3   : > { %p35_p1 = scmp.ge.s32.totalorder %s33_s15, 4  ;;  %p183_p2 = scmp.lt.s32.totalorder %s3728_s14, 5 }
   0x5   : > { %s4813_s15 = smov (%p35_p1, %s33_s15), 0  ;;  %p184_p3 = pnand %p3246_p0, %p183_p2 }
   0x7   : > { %187 = sbr.rel (%p184_p3) target bundleno = 1001 (0x3e9), region = 28 }
   0xe   : > { %p222_p4 = scmp.lt.s32.totalorder %s3720_s12, 3  ;;  %v4702_v0 = vmov 0.0   ;;  %vm281_vm0 = vcmask 64512   ;;  %s3731_s24 = smov 124  }
   0xf   : > { %1487 = vmatprep.mubr.f32.mxu0 %v4702_v0  ;;  %444 = vmatprep.mubr.f32.mxu1 %v4702_v0 }
  0x10   : > { %s4815_s12 = smov (!%p222_p4, %s3720_s12), 3 }
  0x11   : > { %s3287_s16 = sshll.u32 %s4815_s12, 8  ;;  %s3288_s17 = sshll.u32 %s4815_s12, 4 }
  0x12   : > { %s3780_s20 = scalar_lea.vmem %s4695_s0, %s3287_s16  ;;  %s3785_s23 = scalar_lea.vmem %s4696_s1, %s3288_s17 }
  0x13   : > { %v280_v1 = vld [vmem:[%s3785_s23 + $0x8] sm:$0xff]  ;;  %v279_v2 = vld [vmem:[%s3785_s23] sm:$0xff]  ;;  %v3795_v8 = vld [vmem:[%s3780_s20 + $0x10] sm:$0xff]  ;;  %s243_s27 = scalar_lea.vmem %s4697_s2, %s4815_s12  ;;  %s246_s30 = scalar_lea.vmem %s4698_s3, %s4815_s12 }
  0x14   : > { %v247_v3 = vld [vmem:[%s3780_s20] sm:$0xff]  ;;  %v378_v4 = vand.u32 4294901760, %v280_v1  ;;  %v3790_v5 = vand.u32 4294901760, %v279_v2  ;;  %v248_v7 = vld [vmem:[%s3780_s20 + $0x8] sm:$0xff]  ;;  %v3798_v9 = vld [vmem:[%s3780_s20 + $0x18] sm:$0xff]  ;;  %v289_v16 = vsel %vm281_vm0, %v3795_v8, 0 }
  0x15   : > { %v283_v6 = vsel %vm281_vm0, %v247_v3, 0  ;;  %v286_v13 = vsel %vm281_vm0, %v248_v7, 0  ;;  %v251_v14 = vld [vmem:[%s3780_s20 + $0x20] sm:$0xff]  ;;  %v292_v17 = vsel %vm281_vm0, %v3798_v9, 0  ;;  %v3820_v22 = vand.u32 4294901760, %v289_v16  ;;  %v3823_v23 = vld [vmem:[%s3780_s20 + $0x28] sm:$0xff] }
  0x16   : > { %1422 = vmatprep.subr.mxu0 %v378_v4  ;;  %v3801_v10 = vsub.f32 %v279_v2, %v3790_v5  ;;  %v3803_v11 = vand.u32 4294901760, %v283_v6  ;;  %379 = vmatprep.subr.mxu1 %v378_v4  ;;  %v798_v12 = vsub.f32 %v280_v1, %v378_v4  ;;  %v3809_v15 = vand.u32 4294901760, %v286_v13  ;;  %v3848_v40 = vld [vmem:[%s3780_s20 + $0x30] sm:$0xff]  ;;  %v3862_v47 = vld [vmem:[%s3780_s20 + $0x38] sm:$0xff]  ;;  %v3876_v54 = vld [vmem:[%s3780_s20 + $0x40] sm:$0xff] }
  0x17   : > { %1424 = vmatpush1.msra.mxu0 %v3790_v5  ;;  %381 = vmatpush1.msra.mxu1 %v3790_v5  ;;  %v295_v18 = vsel %vm281_vm0, %v251_v14, 0  ;;  %v3828_v25 = vand.u32 4294901760, %v292_v17  ;;  %v3833_v29 = vsub.f32 %v289_v16, %v3820_v22  ;;  %v298_v32 = vsel %vm281_vm0, %v3823_v23, 0  ;;  %v3890_v61 = vld [vmem:[%s3780_s20 + $0x48] sm:$0xff] }
  0x18   : > { %v3817_v19 = vsub.f32 %v283_v6, %v3803_v11  ;;  %v799_v20 = vand.u32 4294901760, %v798_v12  ;;  %v805_v21 = vand.u32 4294901760, %v3801_v10  ;;  %v3826_v24 = vsub.f32 %v286_v13, %v3809_v15 }
  0x19   : > { %v3836_v31 = vand.u32 4294901760, %v295_v18  ;;  %v469_v35 = vand.u32 4294901760, %v3833_v29  ;;  %v3843_v36 = vsub.f32 %v292_v17, %v3828_v25  ;;  %v3850_v41 = vand.u32 4294901760, %v298_v32 }
  0x1a   : > { %v447_v26 = vand.u32 4294901760, %v3817_v19  ;;  %v800_v27 = vsub.f32 %v798_v12, %v799_v20  ;;  %1779 = vmatprep.subr.mxu0 %v799_v20  ;;  %v806_v28 = vsub.f32 %v3801_v10, %v805_v21  ;;  %v458_v30 = vand.u32 4294901760, %v3826_v24 }
  0x1b   : > { %4737 = vst [vmem:[#allocation4_spill] sm:$0xff] %v3843_v36  ;;  %v470_v43 = vsub.f32 %v3833_v29, %v469_v35  ;;  %v480_v44 = vand.u32 4294901760, %v3843_v36  ;;  %v3855_v45 = vsub.f32 %v295_v18, %v3836_v31  ;;  %v301_v46 = vsel %vm281_vm0, %v3848_v40, 0  ;;  %v3918_v18 = vld [vmem:[%s3780_s20 + $0x58] sm:$0xff] }
  0x1c   : > { %1491 = vmatmul.mubr.f32.vlgmr.msra.gmra.mrb[0].mxu0 %v447_v26  ;;  %v801_v33 = vand.u32 4294901760, %v800_v27  ;;  %v448_v34 = vsub.f32 %v3817_v19, %v447_v26  ;;  %v807_v37 = vand.u32 4294901760, %v806_v28  ;;  %v459_v38 = vsub.f32 %v3826_v24, %v458_v30 }
  0x1d   : > { %1496 = vmatprep.mubr.f32.mxu0 %v4702_v0  ;;  %1783 = vmatpush1.msra.mxu0 %v805_v21  ;;  %4738 = vst [vmem:[#allocation5_spill] sm:$0xff] %v3855_v45  ;;  %v3865_v48 = vsub.f32 %v298_v32, %v3850_v41  ;;  %v471_v49 = vand.u32 4294901760, %v470_v43  ;;  %v481_v50 = vsub.f32 %v3843_v36, %v480_v44  ;;  %v491_v51 = vand.u32 4294901760, %v3855_v45  ;;  %v275_v36 = vld [vmem:[%s3780_s20 + $0xe0] sm:$0xff] }
  0x1e   : > { %802 = vmatprep.subr.mxu1 %v801_v33  ;;  %v449_v39 = vand.u32 4294901760, %v448_v34  ;;  %2072 = vmatprep.subr.mxu0 %v378_v4  ;;  %v460_v42 = vand.u32 4294901760, %v459_v38  ;;  %v3869_v52 = vand.u32 4294901760, %v301_v46  ;;  %v304_v53 = vsel %vm281_vm0, %v3862_v47, 0  ;;  %v3900_v4 = vld [vmem:[%s3780_s20 + $0x50] sm:$0xff] }
  0x1f   : > { %4739 = vst [vmem:[#allocation6_spill] sm:$0xff] %v3865_v48  ;;  %v502_v55 = vand.u32 4294901760, %v3865_v48  ;;  %v482_v56 = vand.u32 4294901760, %v481_v50  ;;  %v492_v57 = vsub.f32 %v3855_v45, %v491_v51  ;;  %v3883_v59 = vand.u32 4294901760, %v304_v53  ;;  %v4112_v45 = vld [vmem:[%s3780_s20 + $0xc8] sm:$0xff] }
  0x20   : > { %450 = vmatmul.mubr.f32.vlgmr.msra.gmra.mrb[0].mxu1 %v449_v39  ;;  %1500 = vmatmul.mubr.f32.gmra.mrb[2].mxu0 %v458_v30  ;;  %v3881_v58 = vsub.f32 %v301_v46, %v3869_v52  ;;  %v307_v60 = vsel %vm281_vm0, %v3876_v54, 0  ;;  %v310_v6 = vsel %vm281_vm0, %v3890_v61, 0  ;;  %v3928_v30 = vld [vmem:[%s3780_s20 + $0x60] sm:$0xff]  ;;  %v316_v32 = vsel %vm281_vm0, %v3918_v18, 0  ;;  %4768 = vst [vmem:[#allocation34_spill] sm:$0xff] %v4112_v45 }
  0x21   : > { %808 = vmatpush1.msra.mxu1 %v807_v37  ;;  %455 = vmatprep.mubr.f32.mxu1 %v4702_v0  ;;  %v503_v62 = vsub.f32 %v3865_v48, %v502_v55  ;;  %v493_v63 = vand.u32 4294901760, %v492_v57  ;;  %v3895_v2 = vsub.f32 %v304_v53, %v3883_v59  ;;  %v3897_v3 = vand.u32 4294901760, %v307_v60  ;;  %4744 = vst [vmem:[#allocation11_spill] sm:$0xff] %v3928_v30  ;;  %v3960_v53 = vld [vmem:[%s3780_s20 + $0x70] sm:$0xff]  ;;  %v4086_v48 = vld [vmem:[%s3780_s20 + $0xb8] sm:$0xff] }
  0x22   : > { %1505 = vmatprep.mubr.f32.mxu0 %v4702_v0  ;;  %1098 = vmatprep.subr.mxu1 %v798_v12  ;;  %4740 = vst [vmem:[#allocation7_spill] sm:$0xff] %v3881_v58  ;;  %v513_v1 = vand.u32 4294901760, %v3881_v58  ;;  %v313_v12 = vsel %vm281_vm0, %v3900_v4, 0  ;;  %v3913_v17 = vand.u32 4294901760, %v310_v6  ;;  %v319_v34 = vsel %vm281_vm0, %v3928_v30, 0  ;;  %4764 = vst [vmem:[#allocation30_spill] sm:$0xff] %v4086_v48 }
  0x23   : > { %4741 = vst [vmem:[#allocation8_spill] sm:$0xff] %v3895_v2  ;;  %v504_v7 = vand.u32 4294901760, %v503_v62  ;;  %v524_v14 = vand.u32 4294901760, %v3895_v2  ;;  %v3911_v16 = vsub.f32 %v307_v60, %v3897_v3  ;;  %v3920_v20 = vand.u32 4294901760, %v313_v12 }
  0x24   : > { %461 = vmatmul.mubr.f32.gmra.mrb[2].mxu1 %v460_v42  ;;  %1509 = vmatmul.mubr.f32.gmra.mrb[4].mxu0 %v469_v35  ;;  %v514_v13 = vsub.f32 %v3881_v58, %v513_v1  ;;  %v3925_v28 = vsub.f32 %v310_v6, %v3913_v17  ;;  %v3941_v39 = vand.u32 4294901760, %v316_v32  ;;  %v3944_v42 = vld [vmem:[%s3780_s20 + $0x68] sm:$0xff]  ;;  %v3948_v43 = vand.u32 4294901760, %v319_v34 }
  0x25   : > { %466 = vmatprep.mubr.f32.mxu1 %v4702_v0  ;;  %1514 = vmatprep.mubr.f32.mxu0 %v4702_v0  ;;  %4742 = vst [vmem:[#allocation9_spill] sm:$0xff] %v3911_v16  ;;  %v525_v26 = vsub.f32 %v3895_v2, %v524_v14  ;;  %v535_v27 = vand.u32 4294901760, %v3911_v16  ;;  %v3935_v33 = vsub.f32 %v313_v12, %v3920_v20  ;;  %4746 = vst [vmem:[#allocation13_spill] sm:$0xff] %v3944_v42  ;;  %v4072_v2 = vld [vmem:[%s3780_s20 + $0xb0] sm:$0xff] }
  0x26   : > { %v515_v21 = vand.u32 4294901760, %v514_v13  ;;  %4743 = vst [vmem:[#allocation10_spill] sm:$0xff] %v3925_v28  ;;  %v546_v38 = vand.u32 4294901760, %v3925_v28  ;;  %4762 = vst [vmem:[#allocation28_spill] sm:$0xff] %v4072_v2  ;;  %v349_v58 = vsel %vm281_vm0, %v4072_v2, 0 }
  0x27   : > { %4745 = vst [vmem:[#allocation12_spill] sm:$0xff] %v3935_v33  ;;  %v526_v35 = vand.u32 4294901760, %v525_v26  ;;  %v536_v37 = vsub.f32 %v3911_v16, %v535_v27  ;;  %v557_v50 = vand.u32 4294901760, %v3935_v33  ;;  %v3988_v26 = vld [vmem:[%s3780_s20 + $0x80] sm:$0xff]  ;;  %vm2636_vm1 = vcmp.lt.f32.partialorder %v3795_v8, 5e+29 }
  0x28   : > { %472 = vmatmul.mubr.f32.gmra.mrb[4].mxu1 %v471_v49  ;;  %1518 = vmatmul.mubr.f32.gmra.mrb[6].mxu0 %v480_v44  ;;  %v322_v44 = vsel %vm281_vm0, %v3944_v42, 0  ;;  %v547_v49 = vsub.f32 %v3925_v28, %v546_v38  ;;  %4750 = vst [vmem:[#allocation17_spill] sm:$0xff] %v3988_v26  ;;  %v4058_v28 = vld [vmem:[%s3780_s20 + $0xa8] sm:$0xff]  ;;  %vm2637_vm2 = vcmp.lt.f32.partialorder %v3798_v9, 5e+29  ;;  %v3695_v9 = vld [vmem:[%s3780_s20] sm:$0xff] }
  0x29   : > { %477 = vmatprep.mubr.f32.mxu1 %v4702_v0  ;;  %1523 = vmatprep.mubr.f32.mxu0 %v4702_v0  ;;  %v537_v46 = vand.u32 4294901760, %v536_v37  ;;  %v558_v60 = vsub.f32 %v3935_v33, %v557_v50  ;;  %4760 = vst [vmem:[#allocation26_spill] sm:$0xff] %v4058_v28  ;;  %vm2640_vm3 = vcmp.lt.f32.partialorder %v3848_v40, 5e+29  ;;  %vm2641_vm4 = vcmp.lt.f32.partialorder %v3862_v47, 5e+29 }
  0x2a   : > { %v548_v57 = vand.u32 4294901760, %v547_v49  ;;  %vm2644_vm5 = vcmp.lt.f32.partialorder %v3900_v4, 5e+29  ;;  %vm2645_vm6 = vcmp.lt.f32.partialorder %v3918_v18, 5e+29  ;;  %v3696_v40 = vld [vmem:[%s3780_s20 + $0x8] sm:$0xff] }
  0x2b   : > { %v559_v12 = vand.u32 4294901760, %v558_v60  ;;  %vm2634_vm7 = vcmp.lt.f32.partialorder %v3695_v9, 5e+29  ;;  %vm2635_vm8 = vcmp.lt.f32.partialorder %v3696_v40, 5e+29 }
  0x2c   : > { %483 = vmatmul.mubr.f32.gmra.mrb[6].mxu1 %v482_v56  ;;  %1527 = vmatmul.mubr.f32.gmra.mrb[8].mxu0 %v491_v51  ;;  %v3955_v51 = vsub.f32 %v316_v32, %v3941_v39  ;;  %v3965_v56 = vand.u32 4294901760, %v322_v44  ;;  %vm2648_vm9 = vcmp.lt.f32.partialorder %v3960_v53, 5e+29  ;;  %vm2639_vm12 = vcmp.lt.f32.partialorder %v3823_v23, 5e+29 }
  0x2d   : > { %488 = vmatprep.mubr.f32.mxu1 %v4702_v0  ;;  %1532 = vmatprep.mubr.f32.mxu0 %v4702_v0  ;;  %vm2642_vm13 = vcmp.lt.f32.partialorder %v3876_v54, 5e+29  ;;  %vm2643_vm14 = vcmp.lt.f32.partialorder %v3890_v61, 5e+29 }
  0x2e   : > { %4747 = vst [vmem:[#allocation14_spill] sm:$0xff] %v3955_v51  ;;  %v568_v62 = vand.u32 4294901760, %v3955_v51 }
  0x30   : > { %494 = vmatmul.mubr.f32.gmra.mrb[8].mxu1 %v493_v63  ;;  %1536 = vmatmul.mubr.f32.gmra.mrb[10].mxu0 %v502_v55  ;;  %v3963_v55 = vsub.f32 %v319_v34, %v3948_v43  ;;  %v325_v63 = vsel %vm281_vm0, %v3960_v53, 0  ;;  %v569_v13 = vsub.f32 %v3955_v51, %v568_v62  ;;  %v4758_v51 = vmov 0.0   ;;  %v4776_v53 = vld [vmem:[#allocation13_spill] sm:$0xff] }
  0x31   : > { %499 = vmatprep.mubr.f32.mxu1 %v4702_v0  ;;  %1541 = vmatprep.mubr.f32.mxu0 %v4702_v0  ;;  %v3258_v8 = vsel %vm2641_vm4, 1.0, %v4758_v51  ;;  %v3251_v47 = vsel %vm2634_vm7, 1.0, %v4758_v51  ;;  %v3262_v18 = vsel %vm2645_vm6, 1.0, %v4758_v51  ;;  %v3260_v54 = vsel %vm2643_vm14, 1.0, %v4758_v51 }
  0x32   : > { %4748 = vst [vmem:[#allocation15_spill] sm:$0xff] %v3963_v55  ;;  %v579_v6 = vand.u32 4294901760, %v3963_v55  ;;  %v570_v34 = vand.u32 4294901760, %v569_v13 }
  0x34   : > { %505 = vmatmul.mubr.f32.gmra.mrb[10].mxu1 %v504_v7  ;;  %1545 = vmatmul.mubr.f32.gmra.mrb[12].mxu0 %v513_v1  ;;  %v3974_v1 = vld [vmem:[%s3780_s20 + $0x78] sm:$0xff]  ;;  %v3978_v7 = vsub.f32 %v322_v44, %v3965_v56  ;;  %v4000_v44 = vld [vmem:[%s3780_s20 + $0x88] sm:$0xff] }
  0x35   : > { %510 = vmatprep.mubr.f32.mxu1 %v4702_v0  ;;  %1550 = vmatprep.mubr.f32.mxu0 %v4702_v0  ;;  %4752 = vst [vmem:[#allocation19_spill] sm:$0xff] %v4000_v44  ;;  %v334_v49 = vsel %vm281_vm0, %v4000_v44, 0  ;;  %vm2649_vm11 = vcmp.lt.f32.partialorder %v3974_v1, 5e+29 }
  0x36   : > { %4749 = vst [vmem:[#allocation16_spill] sm:$0xff] %v3978_v7  ;;  %v590_v32 = vand.u32 4294901760, %v3978_v7 }
  0x38   : > { %516 = vmatmul.mubr.f32.gmra.mrb[12].mxu1 %v515_v21  ;;  %1554 = vmatmul.mubr.f32.gmra.mrb[14].mxu0 %v524_v14  ;;  %v3981_v14 = vand.u32 4294901760, %v325_v63  ;;  %v328_v21 = vsel %vm281_vm0, %v3974_v1, 0  ;;  %v3266_v1 = vsel %vm2649_vm11, 1.0, %v4758_v51 }
  0x39   : > { %521 = vmatprep.mubr.f32.mxu1 %v4702_v0  ;;  %1559 = vmatprep.mubr.f32.mxu0 %v4702_v0  ;;  %v3995_v37 = vand.u32 4294901760, %v328_v21 }
  0x3c   : > { %527 = vmatmul.mubr.f32.gmra.mrb[14].mxu1 %v526_v35  ;;  %1563 = vmatmul.mubr.f32.gmra.mrb[16].mxu0 %v535_v27  ;;  %v580_v27 = vsub.f32 %v3963_v55, %v579_v6  ;;  %v3993_v35 = vsub.f32 %v325_v63, %v3981_v14  ;;  %v4016_v63 = vld [vmem:[%s3780_s20 + $0x90] sm:$0xff] }
  0x3d   : > { %532 = vmatprep.mubr.f32.mxu1 %v4702_v0  ;;  %1568 = vmatprep.mubr.f32.mxu0 %v4702_v0  ;;  %vm2652_vm15 = vcmp.lt.f32.partialorder %v4016_v63, 5e+29 }
  0x3e   : > { %4751 = vst [vmem:[#allocation18_spill] sm:$0xff] %v3993_v35  ;;  %v601_v60 = vand.u32 4294901760, %v3993_v35 }
  0x40   : > { %538 = vmatmul.mubr.f32.gmra.mrb[16].mxu1 %v537_v46  ;;  %1572 = vmatmul.mubr.f32.gmra.mrb[18].mxu0 %v546_v38  ;;  %v331_v38 = vsel %vm281_vm0, %v3988_v26, 0 }
  0x41   : > { %543 = vmatprep.mubr.f32.mxu1 %v4702_v0  ;;  %1577 = vmatprep.mubr.f32.mxu0 %v4702_v0  ;;  %v4004_v46 = vand.u32 4294901760, %v331_v38 }
  0x44   : > { %549 = vmatmul.mubr.f32.gmra.mrb[18].mxu1 %v548_v57  ;;  %1581 = vmatmul.mubr.f32.gmra.mrb[20].mxu0 %v557_v50  ;;  %v581_v50 = vand.u32 4294901760, %v580_v27  ;;  %v591_v57 = vsub.f32 %v3978_v7, %v590_v32  ;;  %v337_v7 = vsel %vm281_vm0, %v4016_v63, 0 }
  0x45   : > { %554 = vmatprep.mubr.f32.mxu1 %v4702_v0  ;;  %1586 = vmatprep.mubr.f32.mxu0 %v4702_v0  ;;  %v4039_v55 = vand.u32 4294901760, %v337_v7 }
  0x46   : > { %v592_v13 = vand.u32 4294901760, %v591_v57 }
  0x47   : > { %v4053_v33 = vsub.f32 %v337_v7, %v4039_v55  ;;  %v346_v7 = vsel %vm281_vm0, %v4058_v28, 0  ;;  %v4096_v28 = vld [vmem:[%s3780_s20 + $0xc0] sm:$0xff] }
  0x48   : > { %560 = vmatmul.mubr.f32.gmra.mrb[20].mxu1 %v559_v12  ;;  %1590 = vmatmul.mubr.f32.gmra.mrb[22].mxu0 %v568_v62  ;;  %v4011_v62 = vsub.f32 %v328_v21, %v3995_v37  ;;  %v4018_v12 = vand.u32 4294901760, %v334_v49  ;;  %v4026_v21 = vld [vmem:[%s3780_s20 + $0x98] sm:$0xff]  ;;  %4766 = vst [vmem:[#allocation32_spill] sm:$0xff] %v4096_v28 }
  0x49   : > { %565 = vmatprep.mubr.f32.mxu1 %v4702_v0  ;;  %1595 = vmatprep.mubr.f32.mxu0 %v4702_v0  ;;  %4755 = vst [vmem:[#allocation22_spill] sm:$0xff] %v4026_v21  ;;  %4759 = vst [vmem:[#allocation25_spill] sm:$0xff] %v4053_v33 }
  0x4a   : > { %4753 = vst [vmem:[#allocation20_spill] sm:$0xff] %v4011_v62  ;;  %v612_v27 = vand.u32 4294901760, %v4011_v62 }
  0x4c   : > { %571 = vmatmul.mubr.f32.gmra.mrb[22].mxu1 %v570_v34  ;;  %1599 = vmatmul.mubr.f32.gmra.mrb[24].mxu0 %v579_v6  ;;  %v602_v6 = vsub.f32 %v3993_v35, %v601_v60  ;;  %v4023_v34 = vsub.f32 %v331_v38, %v4004_v46  ;;  %v613_v38 = vsub.f32 %v4011_v62, %v612_v27 }
  0x4d   : > { %576 = vmatprep.mubr.f32.mxu1 %v4702_v0  ;;  %1604 = vmatprep.mubr.f32.mxu0 %v4702_v0 }
  0x4e   : > { %4754 = vst [vmem:[#allocation21_spill] sm:$0xff] %v4023_v34  ;;  %v603_v57 = vand.u32 4294901760, %v602_v6  ;;  %v623_v35 = vand.u32 4294901760, %v4023_v34 }
  0x50   : > { %582 = vmatmul.mubr.f32.gmra.mrb[24].mxu1 %v581_v50  ;;  %1608 = vmatmul.mubr.f32.gmra.mrb[26].mxu0 %v590_v32  ;;  %v4033_v32 = vsub.f32 %v334_v49, %v4018_v12  ;;  %v340_v50 = vsel %vm281_vm0, %v4026_v21, 0  ;;  %v624_v6 = vsub.f32 %v4023_v34, %v623_v35  ;;  %v4774_v61 = vld [vmem:[#allocation22_spill] sm:$0xff] }
  0x51   : > { %587 = vmatprep.mubr.f32.mxu1 %v4702_v0  ;;  %1613 = vmatprep.mubr.f32.mxu0 %v4702_v0  ;;  %v4042_v0 = vld [vmem:[%s3780_s20 + $0xa0] sm:$0xff]  ;;  %v4046_v49 = vand.u32 4294901760, %v340_v50 }
  0x52   : > { %4756 = vst [vmem:[#allocation23_spill] sm:$0xff] %v4033_v32  ;;  %4757 = vst [vmem:[#allocation24_spill] sm:$0xff] %v4042_v0  ;;  %v634_v62 = vand.u32 4294901760, %v4033_v32 }
  0x53   : > { %v4065_v34 = vsub.f32 %v340_v50, %v4046_v49 }
  0x54   : > { %593 = vmatmul.mubr.f32.gmra.mrb[26].mxu1 %v592_v13  ;;  %1617 = vmatmul.mubr.f32.gmra.mrb[28].mxu0 %v601_v60  ;;  %v343_v13 = vsel %vm281_vm0, %v4042_v0, 0  ;;  %v614_v60 = vand.u32 4294901760, %v613_v38  ;;  %v645_v38 = vand.u32 4294901760, %v4053_v33  ;;  %v352_v0 = vsel %vm281_vm0, %v4086_v48, 0  ;;  %v273_v48 = vld [vmem:[%s3780_s20 + $0xd0] sm:$0xff] }
  0x55   : > { %598 = vmatprep.mubr.f32.mxu1 %v4758_v51  ;;  %1622 = vmatprep.mubr.f32.mxu0 %v4758_v51  ;;  %v4060_v16 = vand.u32 4294901760, %v343_v13  ;;  %4761 = vst [vmem:[#allocation27_spill] sm:$0xff] %v4065_v34  ;;  %v656_v50 = vand.u32 4294901760, %v4065_v34  ;;  %v4109_v2 = vand.u32 4294901760, %v352_v0 }
  0x58   : > { %604 = vmatmul.mubr.f32.gmra.mrb[28].mxu1 %v603_v57  ;;  %1626 = vmatmul.mubr.f32.gmra.mrb[30].mxu0 %v612_v27  ;;  %v625_v27 = vand.u32 4294901760, %v624_v6  ;;  %v635_v57 = vsub.f32 %v4033_v32, %v634_v62  ;;  %v646_v6 = vsub.f32 %v4053_v33, %v645_v38  ;;  %v4079_v32 = vand.u32 4294901760, %v346_v7 }
  0x59   : > { %609 = vmatprep.mubr.f32.mxu1 %v4758_v51  ;;  %1631 = vmatprep.mubr.f32.mxu0 %v4758_v51  ;;  %v4093_v33 = vand.u32 4294901760, %v349_v58 }
  0x5c   : > { %615 = vmatmul.mubr.f32.gmra.mrb[30].mxu1 %v614_v60  ;;  %1635 = vmatmul.mubr.f32.gmra.mrb[32].mxu0 %v623_v35  ;;  %v4075_v35 = vsub.f32 %v343_v13, %v4060_v16  ;;  %v636_v60 = vand.u32 4294901760, %v635_v57  ;;  %v4091_v57 = vsub.f32 %v346_v7, %v4079_v32 }
  0x5d   : > { %620 = vmatprep.mubr.f32.mxu1 %v4758_v51  ;;  %1640 = vmatprep.mubr.f32.mxu0 %v4758_v51 }
  0x5e   : > { %4763 = vst [vmem:[#allocation29_spill] sm:$0xff] %v4075_v35  ;;  %v667_v13 = vand.u32 4294901760, %v4075_v35  ;;  %4765 = vst [vmem:[#allocation31_spill] sm:$0xff] %v4091_v57 }
  0x60   : > { %626 = vmatmul.mubr.f32.gmra.mrb[32].mxu1 %v625_v27  ;;  %1644 = vmatmul.mubr.f32.gmra.mrb[34].mxu0 %v634_v62  ;;  %v647_v62 = vand.u32 4294901760, %v646_v6  ;;  %v657_v27 = vsub.f32 %v4065_v34, %v656_v50  ;;  %v678_v6 = vand.u32 4294901760, %v4091_v57  ;;  %v4107_v34 = vsub.f32 %v349_v58, %v4093_v33 }
  0x61   : > { %631 = vmatprep.mubr.f32.mxu1 %v4758_v51  ;;  %1649 = vmatprep.mubr.f32.mxu0 %v4758_v51 }
  0x62   : > { %v658_v7 = vand.u32 4294901760, %v657_v27  ;;  %4767 = vst [vmem:[#allocation33_spill] sm:$0xff] %v4107_v34  ;;  %v679_v58 = vsub.f32 %v4091_v57, %v678_v6  ;;  %v689_v27 = vand.u32 4294901760, %v4107_v34 }
  0x64   : > { %637 = vmatmul.mubr.f32.gmra.mrb[34].mxu1 %v636_v60  ;;  %1653 = vmatmul.mubr.f32.gmra.mrb[36].mxu0 %v645_v38  ;;  %v668_v38 = vsub.f32 %v4075_v35, %v667_v13  ;;  %v355_v60 = vsel %vm281_vm0, %v4096_v28, 0  ;;  %v4123_v28 = vsub.f32 %v352_v0, %v4109_v2  ;;  %v274_v0 = vld [vmem:[%s3780_s20 + $0xd8] sm:$0xff] }
  0x65   : > { %642 = vmatprep.mubr.f32.mxu1 %v4758_v51  ;;  %1658 = vmatprep.mubr.f32.mxu0 %v4758_v51  ;;  %v4116_v35 = vand.u32 4294901760, %v355_v60 }
  0x66   : > { %4769 = vst [vmem:[#allocation35_spill] sm:$0xff] %v4123_v28 }
  0x67   : > { %v4133_v57 = vsub.f32 %v355_v60, %v4116_v35 }
  0x68   : > { %648 = vmatmul.mubr.f32.gmra.mrb[36].mxu1 %v647_v62  ;;  %1662 = vmatmul.mubr.f32.gmra.mrb[38].mxu0 %v656_v50  ;;  %v358_v50 = vsel %vm281_vm0, %v4112_v45, 0  ;;  %v669_v62 = vand.u32 4294901760, %v668_v38  ;;  %v700_v38 = vand.u32 4294901760, %v4123_v28  ;;  %v361_v45 = vsel %vm281_vm0, %v273_v48, 0 }
  0x69   : > { %653 = vmatprep.mubr.f32.mxu1 %v4758_v51  ;;  %1667 = vmatprep.mubr.f32.mxu0 %v4758_v51  ;;  %v4128_v44 = vand.u32 4294901760, %v358_v50  ;;  %4770 = vst [vmem:[#allocation36_spill] sm:$0xff] %v4133_v57  ;;  %v711_v60 = vand.u32 4294901760, %v4133_v57 }
  0x6b   : > { %v4140_v26 = vsub.f32 %v358_v50, %v4128_v44  ;;  %v367_v50 = vsel %vm281_vm0, %v275_v36, 0 }
  0x6c   : > { %659 = vmatmul.mubr.f32.gmra.mrb[38].mxu1 %v658_v7  ;;  %1671 = vmatmul.mubr.f32.gmra.mrb[40].mxu0 %v667_v13  ;;  %v680_v7 = vand.u32 4294901760, %v679_v58  ;;  %v690_v13 = vsub.f32 %v4107_v34, %v689_v27  ;;  %v701_v58 = vsub.f32 %v4123_v28, %v700_v38  ;;  %v4145_v34 = vand.u32 4294901760, %v361_v45  ;;  %v276_v28 = vld [vmem:[%s3780_s20 + $0xe8] sm:$0xff] }
  0x6d   : > { %664 = vmatprep.mubr.f32.mxu1 %v4758_v51  ;;  %1676 = vmatprep.mubr.f32.mxu0 %v4758_v51  ;;  %4771 = vst [vmem:[#allocation37_spill] sm:$0xff] %v4140_v26  ;;  %v4164_v36 = vand.u32 4294901760, %v367_v50 }
  0x70   : > { %670 = vmatmul.mubr.f32.gmra.mrb[40].mxu1 %v669_v62  ;;  %1680 = vmatmul.mubr.f32.gmra.mrb[42].mxu0 %v678_v6  ;;  %v364_v6 = vsel %vm281_vm0, %v274_v0, 0  ;;  %v691_v62 = vand.u32 4294901760, %v690_v13  ;;  %v722_v13 = vand.u32 4294901760, %v4140_v26  ;;  %v4156_v0 = vsub.f32 %v361_v45, %v4145_v34 }
  0x71   : > { %675 = vmatprep.mubr.f32.mxu1 %v4758_v51  ;;  %1685 = vmatprep.mubr.f32.mxu0 %v4758_v51  ;;  %v4150_v48 = vand.u32 4294901760, %v364_v6  ;;  %v370_v45 = vsel %vm281_vm0, %v276_v28, 0 }
  0x72   : > { %4772 = vst [vmem:[#allocation38_spill] sm:$0xff] %v4156_v0  ;;  %v4172_v30 = vand.u32 4294901760, %v370_v45 }
  0x73   : > { %v4162_v42 = vsub.f32 %v364_v6, %v4150_v48 }
  0x74   : > { %681 = vmatmul.mubr.f32.gmra.mrb[42].mxu1 %v680_v7  ;;  %1689 = vmatmul.mubr.f32.gmra.mrb[44].mxu0 %v689_v27  ;;  %v702_v27 = vand.u32 4294901760, %v701_v58  ;;  %v712_v7 = vsub.f32 %v4133_v57, %v711_v60  ;;  %v733_v58 = vand.u32 4294901760, %v4156_v0  ;;  %v277_v57 = vld [vmem:[%s3780_s20 + $0xf0] sm:$0xff]  ;;  %v4184_v21 = vsub.f32 %v370_v45, %v4172_v30 }
  0x75   : > { %686 = vmatprep.mubr.f32.mxu1 %v4758_v51  ;;  %1694 = vmatprep.mubr.f32.mxu0 %v4758_v51  ;;  %4773 = vst [vmem:[#allocation39_spill] sm:$0xff] %v4162_v42  ;;  %v373_v28 = vsel %vm281_vm0, %v277_v57, 0 }
  0x76   : > { %v766_v57 = vand.u32 4294901760, %v4184_v21 }
  0x78   : > { %692 = vmatmul.mubr.f32.gmra.mrb[44].mxu1 %v691_v62  ;;  %1698 = vmatmul.mubr.f32.gmra.mrb[46].mxu0 %v700_v38  ;;  %v713_v38 = vand.u32 4294901760, %v712_v7  ;;  %v723_v62 = vsub.f32 %v4140_v26, %v722_v13  ;;  %v4177_v7 = vsub.f32 %v367_v50, %v4164_v36  ;;  %v278_v26 = vld [vmem:[%s3780_s20 + $0xf8] sm:$0xff] }
  0x79   : > { %697 = vmatprep.mubr.f32.mxu1 %v4758_v51  ;;  %1703 = vmatprep.mubr.f32.mxu0 %v4758_v51  ;;  %v376_v50 = vsel %vm281_vm0, %v278_v26, 0  ;;  %v767_v26 = vsub.f32 %v4184_v21, %v766_v57  ;;  %vm2653_vm0 = vcmp.lt.f32.partialorder %v4774_v61, 5e+29  ;;  %v4792_v61 = vld [vmem:[#allocation12_spill] sm:$0xff] }
  0x7a   : > { %v724_v6 = vand.u32 4294901760, %v723_v62  ;;  %v755_v62 = vand.u32 4294901760, %v4177_v7 }
  0x7c   : > { %703 = vmatmul.mubr.f32.gmra.mrb[46].mxu1 %v702_v27  ;;  %1707 = vmatmul.mubr.f32.gmra.mrb[48].mxu0 %v711_v60  ;;  %v734_v60 = vsub.f32 %v4156_v0, %v733_v58  ;;  %v744_v27 = vand.u32 4294901760, %v4162_v42  ;;  %v4188_v0 = vand.u32 4294901760, %v373_v28 }
  0x7d   : > { %708 = vmatprep.mubr.f32.mxu1 %v4758_v51  ;;  %1712 = vmatprep.mubr.f32.mxu0 %v4758_v51 }
  0x80   : > { %714 = vmatmul.mubr.f32.gmra.mrb[48].mxu1 %v713_v38  ;;  %1716 = vmatmul.mubr.f32.gmra.mrb[50].mxu0 %v722_v13  ;;  %v735_v13 = vand.u32 4294901760, %v734_v60  ;;  %v745_v38 = vsub.f32 %v4162_v42, %v744_v27  ;;  %v4198_v60 = vand.u32 4294901760, %v376_v50 }
  0x81   : > { %719 = vmatprep.mubr.f32.mxu1 %v4758_v51  ;;  %1721 = vmatprep.mubr.f32.mxu0 %v4758_v51 }
  0x82   : > { %v746_v45 = vand.u32 4294901760, %v745_v38 }
  0x84   : > { %725 = vmatmul.mubr.f32.gmra.mrb[50].mxu1 %v724_v6  ;;  %1725 = vmatmul.mubr.f32.gmra.mrb[52].mxu0 %v733_v58  ;;  %v756_v58 = vsub.f32 %v4177_v7, %v755_v62  ;;  %v4196_v6 = vsub.f32 %v373_v28, %v4188_v0  ;;  %v768_v28 = vand.u32 4294901760, %v767_v26  ;;  %v3697_v26 = vld [vmem:[%s3780_s20 + $0x20] sm:$0xff] }
  0x85   : > { %730 = vmatprep.mubr.f32.mxu1 %v4758_v51  ;;  %1730 = vmatprep.mubr.f32.mxu0 %v4758_v51  ;;  %vm2638_vm10 = vcmp.lt.f32.partialorder %v3697_v26, 5e+29  ;;  %v4784_v26 = vld [vmem:[#allocation6_spill] sm:$0xff] }
  0x86   : > { %v757_v42 = vand.u32 4294901760, %v756_v58 }
  0x88   : > { %736 = vmatmul.mubr.f32.gmra.mrb[52].mxu1 %v735_v13  ;;  %1734 = vmatmul.mubr.f32.gmra.mrb[54].mxu0 %v744_v27  ;;  %v777_v13 = vand.u32 4294901760, %v4196_v6  ;;  %v4205_v27 = vsub.f32 %v376_v50, %v4198_v60 }
  0x89   : > { %741 = vmatprep.mubr.f32.mxu1 %v4758_v51  ;;  %1739 = vmatprep.mubr.f32.mxu0 %v4758_v51 }
  0x8a   : > { %v778_v38 = vsub.f32 %v4196_v6, %v777_v13 }
  0x8c   : > { %747 = vmatmul.mubr.f32.gmra.mrb[54].mxu1 %v746_v45  ;;  %1743 = vmatmul.mubr.f32.gmra.mrb[56].mxu0 %v755_v62  ;;  %v788_v45 = vand.u32 4294901760, %v4205_v27  ;;  %v779_v62 = vand.u32 4294901760, %v778_v38  ;;  %v3259_v38 = vsel %vm2642_vm13, 1.0, %v4758_v51 }
  0x8d   : > { %752 = vmatprep.mubr.f32.mxu1 %v4758_v51  ;;  %1748 = vmatprep.mubr.f32.mxu0 %v4758_v51 }
  0x8e   : > { %v789_v50 = vsub.f32 %v4205_v27, %v788_v45 }
  0x90   : > { %758 = vmatmul.mubr.f32.gmra.mrb[56].mxu1 %v757_v42  ;;  %1752 = vmatmul.mubr.f32.gmra.mrb[58].mxu0 %v766_v57  ;;  %v790_v42 = vand.u32 4294901760, %v789_v50 }
  0x91   : > { %763 = vmatprep.mubr.f32.mxu1 %v4758_v51  ;;  %1757 = vmatprep.mubr.f32.mxu0 %v4758_v51 }
  0x94   : > { %769 = vmatmul.mubr.f32.gmra.mrb[58].mxu1 %v768_v28  ;;  %1761 = vmatmul.mubr.f32.gmra.mrb[60].mxu0 %v777_v13  ;;  %v3255_v13 = vsel %vm2638_vm10, 1.0, %v4758_v51  ;;  %v3256_v28 = vsel %vm2639_vm12, 1.0, %v4758_v51 }
  0x95   : > { %774 = vmatprep.mubr.f32.mxu1 %v4758_v51  ;;  %1766 = vmatprep.mubr.f32.mxu0 %v4758_v51  ;;  %v3650_v23 = vpack.i.bf16 %v3256_v28, %v3255_v13  ;;  %v4785_v13 = vld [vmem:[#allocation30_spill] sm:$0xff] }
  0x98   : > { %780 = vmatmul.mubr.f32.gmra.mrb[60].mxu1 %v779_v62  ;;  %1770 = vmatmul.mubr.f32.gmra.mrb[62].mxu0 %v788_v45  ;;  %v4775_v45 = vld [vmem:[#allocation11_spill] sm:$0xff]  ;;  %v3660_v62 = vpack.i.bf16 %v3260_v54, %v3259_v38  ;;  %v4789_v38 = vld [vmem:[#allocation34_spill] sm:$0xff]  ;;  %v4790_v54 = vld [vmem:[#allocation9_spill] sm:$0xff] }
  0x99   : > { %785 = vmatprep.mubr.f32.mxu1 %v4758_v51  ;;  %1846 = vmatprep.mubr.f32.mxu0 %v4758_v51  ;;  %vm2659_vm10 = vcmp.lt.f32.partialorder %v4789_v38, 5e+29 }
  0x9c   : > { %791 = vmatmul.mubr.f32.gmra.mrb[62].mxu1 %v790_v42  ;;  %1848 = vmatmul.mubr.f32.vlgmr.msra.gmra.mrb[0].mxu0 %v3803_v11 }
  0x9d   : > { %871 = vmatprep.mubr.f32.mxu1 %v4758_v51  ;;  %1853 = vmatprep.mubr.f32.mxu0 %v4758_v51 }
  0x9e   : > { %2074 = vmatpush1.msra.mxu0 %v3790_v5  ;;  %v3253_v5 = vsel %vm2636_vm1, 1.0, %v4758_v51  ;;  %vm2646_vm1 = vcmp.lt.f32.partialorder %v4775_v45, 5e+29 }
  0x9f   : > { %v3263_v50 = vsel %vm2646_vm1, 1.0, %v4758_v51 }
  0xa0   : > { %873 = vmatmul.mubr.f32.vlgmr.msra.gmra.mrb[0].mxu1 %v3803_v11  ;;  %1855 = vmatmul.mubr.f32.gmra.mrb[2].mxu0 %v3809_v15 }
  0xa1   : > { %1101 = vmatpush1.msra.mxu1 %v3801_v10  ;;  %878 = vmatprep.mubr.f32.mxu1 %v4758_v51  ;;  %v3254_v10 = vsel %vm2637_vm2, 1.0, %v4758_v51  ;;  %vm2647_vm2 = vcmp.lt.f32.partialorder %v4776_v53, 5e+29 }
  0xa2   : > { %1860 = vmatprep.mubr.f32.mxu0 %v4758_v51  ;;  %v3645_v57 = vpack.i.bf16 %v3254_v10, %v3253_v5  ;;  %v3264_v42 = vsel %vm2647_vm2, 1.0, %v4758_v51  ;;  %v4777_v5 = vld [vmem:[#allocation4_spill] sm:$0xff]  ;;  %v4778_v10 = vld [vmem:[#allocation17_spill] sm:$0xff] }
  0xa4   : > { %880 = vmatmul.mubr.f32.gmra.mrb[2].mxu1 %v3809_v15  ;;  %1862 = vmatmul.mubr.f32.gmra.mrb[4].mxu0 %v3820_v22 }
  0xa5   : > { %885 = vmatprep.mubr.f32.mxu1 %v4758_v51  ;;  %1867 = vmatprep.mubr.f32.mxu0 %v4758_v51 }
  0xa6   : > { %3646 = vrot.lane.b32.xlu0 %v3645_v57, %s3731_s24  ;;  %v4779_v57 = vld [vmem:[#allocation19_spill] sm:$0xff] }
  0xa7   : > { %vm2651_vm4 = vcmp.lt.f32.partialorder %v4779_v57, 5e+29 }
  0xa8   : > { %887 = vmatmul.mubr.f32.gmra.mrb[4].mxu1 %v3820_v22  ;;  %1869 = vmatmul.mubr.f32.gmra.mrb[6].mxu0 %v3828_v25  ;;  %v3268_v40 = vsel %vm2651_vm4, 1.0, %v4758_v51  ;;  %vm3116_vm4 = vcmask 1040384  }
  0xa9   : > { %892 = vmatprep.mubr.f32.mxu1 %v4758_v51  ;;  %1874 = vmatprep.mubr.f32.mxu0 %v4758_v51 }
  0xac   : > { %894 = vmatmul.mubr.f32.gmra.mrb[6].mxu1 %v3828_v25  ;;  %1876 = vmatmul.mubr.f32.gmra.mrb[8].mxu0 %v3836_v31 }
  0xad   : > { %899 = vmatprep.mubr.f32.mxu1 %v4758_v51  ;;  %1881 = vmatprep.mubr.f32.mxu0 %v4758_v51 }
  0xb0   : > { %901 = vmatmul.mubr.f32.gmra.mrb[8].mxu1 %v3836_v31  ;;  %1883 = vmatmul.mubr.f32.gmra.mrb[10].mxu0 %v3850_v41 }
  0xb1   : > { %906 = vmatprep.mubr.f32.mxu1 %v4758_v51  ;;  %1888 = vmatprep.mubr.f32.mxu0 %v4758_v51 }
  0xb4   : > { %908 = vmatmul.mubr.f32.gmra.mrb[10].mxu1 %v3850_v41  ;;  %1890 = vmatmul.mubr.f32.gmra.mrb[12].mxu0 %v3869_v52 }
  0xb5   : > { %913 = vmatprep.mubr.f32.mxu1 %v4758_v51  ;;  %1895 = vmatprep.mubr.f32.mxu0 %v4758_v51 }
  0xb8   : > { %915 = vmatmul.mubr.f32.gmra.mrb[12].mxu1 %v3869_v52  ;;  %1897 = vmatmul.mubr.f32.gmra.mrb[14].mxu0 %v3883_v59 }
  0xb9   : > { %920 = vmatprep.mubr.f32.mxu1 %v4758_v51  ;;  %1902 = vmatprep.mubr.f32.mxu0 %v4758_v51 }
  0xbc   : > { %922 = vmatmul.mubr.f32.gmra.mrb[14].mxu1 %v3883_v59  ;;  %1904 = vmatmul.mubr.f32.gmra.mrb[16].mxu0 %v3897_v3 }
  0xbd   : > { %927 = vmatprep.mubr.f32.mxu1 %v4758_v51  ;;  %1909 = vmatprep.mubr.f32.mxu0 %v4758_v51 }
  0xc0   : > { %929 = vmatmul.mubr.f32.gmra.mrb[16].mxu1 %v3897_v3  ;;  %1911 = vmatmul.mubr.f32.gmra.mrb[18].mxu0 %v3913_v17 }
  0xc1   : > { %934 = vmatprep.mubr.f32.mxu1 %v4758_v51  ;;  %1916 = vmatprep.mubr.f32.mxu0 %v4758_v51 }
  0xc4   : > { %936 = vmatmul.mubr.f32.gmra.mrb[18].mxu1 %v3913_v17  ;;  %1918 = vmatmul.mubr.f32.gmra.mrb[20].mxu0 %v3920_v20 }
  0xc5   : > { %941 = vmatprep.mubr.f32.mxu1 %v4758_v51  ;;  %1923 = vmatprep.mubr.f32.mxu0 %v4758_v51 }
  0xc8   : > { %943 = vmatmul.mubr.f32.gmra.mrb[20].mxu1 %v3920_v20  ;;  %1925 = vmatmul.mubr.f32.gmra.mrb[22].mxu0 %v3941_v39 }
  0xc9   : > { %948 = vmatprep.mubr.f32.mxu1 %v4758_v51  ;;  %1930 = vmatprep.mubr.f32.mxu0 %v4758_v51 }
  0xcc   : > { %950 = vmatmul.mubr.f32.gmra.mrb[22].mxu1 %v3941_v39  ;;  %1932 = vmatmul.mubr.f32.gmra.mrb[24].mxu0 %v3948_v43 }
  0xcd   : > { %955 = vmatprep.mubr.f32.mxu1 %v4758_v51  ;;  %1937 = vmatprep.mubr.f32.mxu0 %v4758_v51 }
  0xd0   : > { %957 = vmatmul.mubr.f32.gmra.mrb[24].mxu1 %v3948_v43  ;;  %1939 = vmatmul.mubr.f32.gmra.mrb[26].mxu0 %v3965_v56 }
  0xd1   : > { %962 = vmatprep.mubr.f32.mxu1 %v4758_v51  ;;  %1944 = vmatprep.mubr.f32.mxu0 %v4758_v51 }
  0xd4   : > { %964 = vmatmul.mubr.f32.gmra.mrb[26].mxu1 %v3965_v56  ;;  %1946 = vmatmul.mubr.f32.gmra.mrb[28].mxu0 %v3981_v14 }
  0xd5   : > { %969 = vmatprep.mubr.f32.mxu1 %v4758_v51  ;;  %1951 = vmatprep.mubr.f32.mxu0 %v4758_v51 }
  0xd8   : > { %971 = vmatmul.mubr.f32.gmra.mrb[28].mxu1 %v3981_v14  ;;  %1953 = vmatmul.mubr.f32.gmra.mrb[30].mxu0 %v3995_v37 }
  0xd9   : > { %976 = vmatprep.mubr.f32.mxu1 %v4758_v51  ;;  %1958 = vmatprep.mubr.f32.mxu0 %v4758_v51 }
  0xdc   : > { %978 = vmatmul.mubr.f32.gmra.mrb[30].mxu1 %v3995_v37  ;;  %1960 = vmatmul.mubr.f32.gmra.mrb[32].mxu0 %v4004_v46 }
  0xdd   : > { %983 = vmatprep.mubr.f32.mxu1 %v4758_v51  ;;  %1965 = vmatprep.mubr.f32.mxu0 %v4758_v51 }
  0xe0   : > { %985 = vmatmul.mubr.f32.gmra.mrb[32].mxu1 %v4004_v46  ;;  %1967 = vmatmul.mubr.f32.gmra.mrb[34].mxu0 %v4018_v12 }
  0xe1   : > { %990 = vmatprep.mubr.f32.mxu1 %v4758_v51  ;;  %1972 = vmatprep.mubr.f32.mxu0 %v4758_v51 }
  0xe4   : > { %992 = vmatmul.mubr.f32.gmra.mrb[34].mxu1 %v4018_v12  ;;  %1974 = vmatmul.mubr.f32.gmra.mrb[36].mxu0 %v4039_v55 }
  0xe5   : > { %997 = vmatprep.mubr.f32.mxu1 %v4758_v51  ;;  %1979 = vmatprep.mubr.f32.mxu0 %v4758_v51 }
  0xe8   : > { %999 = vmatmul.mubr.f32.gmra.mrb[36].mxu1 %v4039_v55  ;;  %1981 = vmatmul.mubr.f32.gmra.mrb[38].mxu0 %v4046_v49 }
  0xe9   : > { %1004 = vmatprep.mubr.f32.mxu1 %v4758_v51  ;;  %1986 = vmatprep.mubr.f32.mxu0 %v4758_v51 }
  0xec   : > { %1006 = vmatmul.mubr.f32.gmra.mrb[38].mxu1 %v4046_v49  ;;  %1988 = vmatmul.mubr.f32.gmra.mrb[40].mxu0 %v4060_v16 }
  0xed   : > { %1011 = vmatprep.mubr.f32.mxu1 %v4758_v51  ;;  %1993 = vmatprep.mubr.f32.mxu0 %v4758_v51 }
  0xf0   : > { %1013 = vmatmul.mubr.f32.gmra.mrb[40].mxu1 %v4060_v16  ;;  %1995 = vmatmul.mubr.f32.gmra.mrb[42].mxu0 %v4079_v32 }
  0xf1   : > { %1018 = vmatprep.mubr.f32.mxu1 %v4758_v51  ;;  %2000 = vmatprep.mubr.f32.mxu0 %v4758_v51 }
  0xf4   : > { %1020 = vmatmul.mubr.f32.gmra.mrb[42].mxu1 %v4079_v32  ;;  %2002 = vmatmul.mubr.f32.gmra.mrb[44].mxu0 %v4093_v33 }
  0xf5   : > { %1025 = vmatprep.mubr.f32.mxu1 %v4758_v51  ;;  %2007 = vmatprep.mubr.f32.mxu0 %v4758_v51 }
  0xf8   : > { %1027 = vmatmul.mubr.f32.gmra.mrb[44].mxu1 %v4093_v33  ;;  %2009 = vmatmul.mubr.f32.gmra.mrb[46].mxu0 %v4109_v2 }
  0xf9   : > { %1032 = vmatprep.mubr.f32.mxu1 %v4758_v51  ;;  %2014 = vmatprep.mubr.f32.mxu0 %v4758_v51 }
  0xfc   : > { %1034 = vmatmul.mubr.f32.gmra.mrb[46].mxu1 %v4109_v2  ;;  %2016 = vmatmul.mubr.f32.gmra.mrb[48].mxu0 %v4116_v35 }
  0xfd   : > { %1039 = vmatprep.mubr.f32.mxu1 %v4758_v51  ;;  %2021 = vmatprep.mubr.f32.mxu0 %v4758_v51 }
 0x100   : > { %1041 = vmatmul.mubr.f32.gmra.mrb[48].mxu1 %v4116_v35  ;;  %2023 = vmatmul.mubr.f32.gmra.mrb[50].mxu0 %v4128_v44 }
 0x101   : > { %1046 = vmatprep.mubr.f32.mxu1 %v4758_v51  ;;  %2028 = vmatprep.mubr.f32.mxu0 %v4758_v51 }
 0x104   : > { %1048 = vmatmul.mubr.f32.gmra.mrb[50].mxu1 %v4128_v44  ;;  %2030 = vmatmul.mubr.f32.gmra.mrb[52].mxu0 %v4145_v34 }
 0x105   : > { %1053 = vmatprep.mubr.f32.mxu1 %v4758_v51  ;;  %2035 = vmatprep.mubr.f32.mxu0 %v4758_v51 }
 0x108   : > { %1055 = vmatmul.mubr.f32.gmra.mrb[52].mxu1 %v4145_v34  ;;  %2037 = vmatmul.mubr.f32.gmra.mrb[54].mxu0 %v4150_v48 }
 0x109   : > { %1060 = vmatprep.mubr.f32.mxu1 %v4758_v51  ;;  %2042 = vmatprep.mubr.f32.mxu0 %v4758_v51 }
 0x10c   : > { %1062 = vmatmul.mubr.f32.gmra.mrb[54].mxu1 %v4150_v48  ;;  %2044 = vmatmul.mubr.f32.gmra.mrb[56].mxu0 %v4164_v36 }
 0x10d   : > { %1067 = vmatprep.mubr.f32.mxu1 %v4758_v51  ;;  %2049 = vmatprep.mubr.f32.mxu0 %v4758_v51 }
 0x110   : > { %1069 = vmatmul.mubr.f32.gmra.mrb[56].mxu1 %v4164_v36  ;;  %2051 = vmatmul.mubr.f32.gmra.mrb[58].mxu0 %v4172_v30 }
 0x111   : > { %1074 = vmatprep.mubr.f32.mxu1 %v4758_v51  ;;  %2056 = vmatprep.mubr.f32.mxu0 %v4758_v51 }
 0x114   : > { %1076 = vmatmul.mubr.f32.gmra.mrb[58].mxu1 %v4172_v30  ;;  %2058 = vmatmul.mubr.f32.gmra.mrb[60].mxu0 %v4188_v0 }
 0x115   : > { %1081 = vmatprep.mubr.f32.mxu1 %v4758_v51  ;;  %2063 = vmatprep.mubr.f32.mxu0 %v4758_v51 }
 0x118   : > { %1083 = vmatmul.mubr.f32.gmra.mrb[60].mxu1 %v4188_v0  ;;  %2065 = vmatmul.mubr.f32.gmra.mrb[62].mxu0 %v4198_v60 }
 0x119   : > { %1088 = vmatprep.mubr.f32.mxu1 %v4758_v51  ;;  %2137 = vmatprep.mubr.f32.mxu0 %v4758_v51 }
 0x11c   : > { %1090 = vmatmul.mubr.f32.gmra.mrb[62].mxu1 %v4198_v60  ;;  %2139 = vmatmul.mubr.f32.vlgmr.msra.gmra.mrb[0].mxu0 %v3803_v11  ;;  %v3257_v11 = vsel %vm2640_vm3, 1.0, %v4758_v51  ;;  %vm2650_vm3 = vcmp.lt.f32.partialorder %v4778_v10, 5e+29 }
 0x11d   : > { %1164 = vmatprep.mubr.f32.mxu1 %v4758_v51  ;;  %2144 = vmatprep.mubr.f32.mxu0 %v4758_v51  ;;  %v3655_v4 = vpack.i.bf16 %v3258_v8, %v3257_v11  ;;  %v3670_v8 = vpack.i.bf16 %v3264_v42, %v3263_v50  ;;  %v3267_v9 = vsel %vm2650_vm3, 1.0, %v4758_v51 }
 0x11f   : > { %3656 = vrot.lane.b32.xlu0 %v3655_v4, %s3731_s24  ;;  %v4782_v4 = vld [vmem:[#allocation24_spill] sm:$0xff] }
 0x120   : > { %1167 = vmatmul.mubr.f32.vlgmr.msra.gmra.mrb[0].mxu1 %v3817_v19  ;;  %2146 = vmatmul.mubr.f32.gmra.mrb[2].mxu0 %v3809_v15  ;;  %v3261_v19 = vsel %vm2644_vm5, 1.0, %v4758_v51  ;;  %v3252_v15 = vsel %vm2635_vm8, 1.0, %v4758_v51  ;;  %vm2654_vm6 = vcmp.lt.f32.partialorder %v4782_v4, 5e+29  ;;  %vm2657_vm8 = vcmp.lt.f32.partialorder %v4785_v13, 5e+29 }
 0x121   : > { %1172 = vmatprep.mubr.f32.mxu1 %v4758_v51  ;;  %2151 = vmatprep.mubr.f32.mxu0 %v4758_v51  ;;  %v3640_v58 = vpack.i.bf16 %v3252_v15, %v3251_v47  ;;  %v4780_v47 = vld [vmem:[#allocation5_spill] sm:$0xff]  ;;  %v3680_v15 = vpack.i.bf16 %v3268_v40, %v3267_v9  ;;  %v3699_v40 = vld [vmem:[%s3785_s23] sm:$0xff] }
 0x122   : > { %v3698_v9 = vld [vmem:[%s3785_s23 + $0x8] sm:$0xff]  ;;  %vm3077_vm12 = vcmp.lt.f32.partialorder %v3699_v40, 5e+29 }
 0x123   : > { %3641 = vrot.lane.b32.xlu1 %v3640_v58, %s3731_s24  ;;  %v3271_v58 = vsel %vm2654_vm6, 1.0, %v4758_v51  ;;  %vm3078_vm11 = vcmp.lt.f32.partialorder %v3698_v9, 5e+29  ;;  %v4550_v13 = vsel %vm3077_vm12, 1.0, %v4758_v51 }
 0x124   : > { %1175 = vmatmul.mubr.f32.gmra.mrb[2].mxu1 %v3826_v24  ;;  %2153 = vmatmul.mubr.f32.gmra.mrb[4].mxu0 %v3820_v22  ;;  %v3665_v24 = vpack.i.bf16 %v3262_v18, %v3261_v19  ;;  %v3265_v22 = vsel %vm2648_vm9, 1.0, %v4758_v51  ;;  %v4783_v19 = vld [vmem:[#allocation26_spill] sm:$0xff] }
 0x125   : > { %1180 = vmatprep.mubr.f32.mxu1 %v4758_v51  ;;  %2158 = vmatprep.mubr.f32.mxu0 %v4758_v51  ;;  %v3675_v63 = vpack.i.bf16 %v3266_v1, %v3265_v22  ;;  %vm2655_vm7 = vcmp.lt.f32.partialorder %v4783_v19, 5e+29  ;;  %v4786_v22 = vld [vmem:[#allocation7_spill] sm:$0xff]  ;;  %v4788_v1 = vld [vmem:[#allocation8_spill] sm:$0xff] }
 0x126   : > { %3666 = vrot.lane.b32.xlu0 %v3665_v24, %s3731_s24  ;;  %v3274_v24 = vsel %vm2657_vm8, 1.0, %v4758_v51 }
 0x127   : > { %3651 = vrot.lane.b32.xlu1 %v3650_v23, %s3731_s24  ;;  %v4787_v23 = vld [vmem:[#allocation32_spill] sm:$0xff] }
 0x128   : > { %1183 = vmatmul.mubr.f32.gmra.mrb[4].mxu1 %v3833_v29  ;;  %2160 = vmatmul.mubr.f32.gmra.mrb[6].mxu0 %v3828_v25  ;;  %v3269_v29 = vsel %vm2652_vm15, 1.0, %v4758_v51  ;;  %v3270_v25 = vsel %vm2653_vm0, 1.0, %v4758_v51  ;;  %vm2658_vm9 = vcmp.lt.f32.partialorder %v4787_v23, 5e+29  ;;  %vm2598_vm0 = vcmask 7168  }
 0x129   : > { %1188 = vmatprep.mubr.f32.mxu1 %v4758_v51  ;;  %2165 = vmatprep.mubr.f32.mxu0 %v4758_v51  ;;  %v3685_v11 = vpack.i.bf16 %v3270_v25, %v3269_v29 }
 0x12a   : > { %3676 = vrot.lane.b32.xlu0 %v3675_v63, %s3731_s24 }
 0x12b   : > { %3661 = vrot.lane.b32.xlu1 %v3660_v62, %s3731_s24 }
 0x12c   : > { %1191 = vmatmul.mubr.f32.gmra.mrb[6].mxu1 %v4777_v5  ;;  %2167 = vmatmul.mubr.f32.gmra.mrb[8].mxu0 %v3836_v31  ;;  %v4781_v31 = vld [vmem:[#allocation28_spill] sm:$0xff] }
 0x12d   : > { %1196 = vmatprep.mubr.f32.mxu1 %v4758_v51  ;;  %2172 = vmatprep.mubr.f32.mxu0 %v4758_v51  ;;  %vm2656_vm5 = vcmp.lt.f32.partialorder %v4781_v31, 5e+29 }
 0x12e   : > { %3686 = vrot.lane.b32.xlu0 %v3685_v11, %s3731_s24  ;;  %v3273_v18 = vsel %vm2656_vm5, 1.0, %v4758_v51  ;;  %vm2368_vm5 = vcmask 0  }
 0x12f   : > { %3671 = vrot.lane.b32.xlu1 %v3670_v8, %s3731_s24  ;;  %2369 = vst.msk [vmem:[%s243_s27] sm:$0x1] %vm2368_vm5, %v4758_v51  ;;  %2370 = vst.msk [vmem:[%s246_s30] sm:$0x1] %vm2368_vm5, %v4758_v51 }
 0x130   : > { %1199 = vmatmul.mubr.f32.gmra.mrb[8].mxu1 %v4780_v47  ;;  %2174 = vmatmul.mubr.f32.gmra.mrb[10].mxu0 %v3850_v41  ;;  %v3272_v41 = vsel %vm2655_vm7, 1.0, %v4758_v51 }
 0x131   : > { %1204 = vmatprep.mubr.f32.mxu1 %v4758_v51  ;;  %2179 = vmatprep.mubr.f32.mxu0 %v4758_v51  ;;  %v3690_v28 = vpack.i.bf16 %v3272_v41, %v3271_v58 }
 0x132   : > { %2807 = vrot.lane.b32.xlu0 %v3273_v18, %s3731_s24 }
 0x133   : > { %3681 = vrot.lane.b32.xlu1 %v3680_v15, %s3731_s24 }
 0x134   : > { %1207 = vmatmul.mubr.f32.gmra.mrb[10].mxu1 %v4784_v26  ;;  %2181 = vmatmul.mubr.f32.gmra.mrb[12].mxu0 %v3869_v52  ;;  %v3275_v52 = vsel %vm2658_vm9, 1.0, %v4758_v51  ;;  %v4547_v26 = vsel %vm3078_vm11, 1.0, %v4758_v51 }
 0x135   : > { %1212 = vmatprep.mubr.f32.mxu1 %v4758_v51  ;;  %2186 = vmatprep.mubr.f32.mxu0 %v4758_v51 }
 0x136   : > { %2809 = vrot.lane.b32.xlu0 %v3274_v24, %s3731_s24 }
 0x137   : > { %3691 = vrot.lane.b32.xlu1 %v3690_v28, %s3731_s24 }
 0x138   : > { %1215 = vmatmul.mubr.f32.gmra.mrb[12].mxu1 %v4786_v22  ;;  %2188 = vmatmul.mubr.f32.gmra.mrb[14].mxu0 %v3883_v59  ;;  %v3276_v59 = vsel %vm2659_vm10, 1.0, %v4758_v51 }
 0x139   : > { %1220 = vmatprep.mubr.f32.mxu1 %v4758_v51  ;;  %2193 = vmatprep.mubr.f32.mxu0 %v4758_v51 }
 0x13a   : > { %2811 = vrot.lane.b32.xlu0 %v3275_v52, %s3731_s24 }
 0x13c   : > { %1223 = vmatmul.mubr.f32.gmra.mrb[14].mxu1 %v4788_v1  ;;  %2195 = vmatmul.mubr.f32.gmra.mrb[16].mxu0 %v3897_v3  ;;  %v4791_v3 = vld [vmem:[#allocation10_spill] sm:$0xff] }
 0x13d   : > { %1228 = vmatprep.mubr.f32.mxu1 %v4758_v51  ;;  %2200 = vmatprep.mubr.f32.mxu0 %v4758_v51 }
 0x13e   : > { %2813 = vrot.lane.b32.xlu0 %v3276_v59, %s3731_s24 }
 0x140   : > { %1231 = vmatmul.mubr.f32.gmra.mrb[16].mxu1 %v4790_v54  ;;  %2202 = vmatmul.mubr.f32.gmra.mrb[18].mxu0 %v3913_v17  ;;  %v4793_v17 = vld [vmem:[#allocation14_spill] sm:$0xff] }
 0x141   : > { %1236 = vmatprep.mubr.f32.mxu1 %v4758_v51  ;;  %2207 = vmatprep.mubr.f32.mxu0 %v4758_v51 }
 0x144   : > { %1239 = vmatmul.mubr.f32.gmra.mrb[18].mxu1 %v4791_v3  ;;  %2209 = vmatmul.mubr.f32.gmra.mrb[20].mxu0 %v3920_v20  ;;  %v4794_v20 = vld [vmem:[#allocation15_spill] sm:$0xff]  ;;  %v3086_v3 = vcombine.low %v4550_v13, %v4547_v26  ;;  %v3702_v13 = vld [vmem:[%s3780_s20 + $0xe0] sm:$0xff] }
 0x145   : > { %1244 = vmatprep.mubr.f32.mxu1 %v4758_v51  ;;  %2214 = vmatprep.mubr.f32.mxu0 %v4758_v51  ;;  %vm2662_vm15 = vcmp.lt.f32.partialorder %v3702_v13, 5e+29 }
 0x148   : > { %1247 = vmatmul.mubr.f32.gmra.mrb[20].mxu1 %v4792_v61  ;;  %2216 = vmatmul.mubr.f32.gmra.mrb[22].mxu0 %v3941_v39  ;;  %v4795_v39 = vld [vmem:[#allocation16_spill] sm:$0xff] }
 0x149   : > { %1252 = vmatprep.mubr.f32.mxu1 %v4758_v51  ;;  %2221 = vmatprep.mubr.f32.mxu0 %v4758_v51 }
 0x14c   : > { %1255 = vmatmul.mubr.f32.gmra.mrb[22].mxu1 %v4793_v17  ;;  %2223 = vmatmul.mubr.f32.gmra.mrb[24].mxu0 %v3948_v43  ;;  %v4796_v43 = vld [vmem:[#allocation18_spill] sm:$0xff] }
 0x14d   : > { %1260 = vmatprep.mubr.f32.mxu1 %v4758_v51  ;;  %2228 = vmatprep.mubr.f32.mxu0 %v4758_v51 }
 0x150   : > { %1263 = vmatmul.mubr.f32.gmra.mrb[24].mxu1 %v4794_v20  ;;  %2230 = vmatmul.mubr.f32.gmra.mrb[26].mxu0 %v3965_v56  ;;  %v4797_v56 = vld [vmem:[#allocation20_spill] sm:$0xff] }
 0x151   : > { %1268 = vmatprep.mubr.f32.mxu1 %v4758_v51  ;;  %2235 = vmatprep.mubr.f32.mxu0 %v4758_v51 }
 0x154   : > { %1271 = vmatmul.mubr.f32.gmra.mrb[26].mxu1 %v4795_v39  ;;  %2237 = vmatmul.mubr.f32.gmra.mrb[28].mxu0 %v3981_v14  ;;  %v4798_v14 = vld [vmem:[#allocation21_spill] sm:$0xff] }
 0x155   : > { %1276 = vmatprep.mubr.f32.mxu1 %v4758_v51  ;;  %2242 = vmatprep.mubr.f32.mxu0 %v4758_v51 }
 0x158   : > { %1279 = vmatmul.mubr.f32.gmra.mrb[28].mxu1 %v4796_v43  ;;  %2244 = vmatmul.mubr.f32.gmra.mrb[30].mxu0 %v3995_v37  ;;  %v4799_v37 = vld [vmem:[#allocation23_spill] sm:$0xff] }
 0x159   : > { %1284 = vmatprep.mubr.f32.mxu1 %v4758_v51  ;;  %2249 = vmatprep.mubr.f32.mxu0 %v4758_v51 }
 0x15c   : > { %1287 = vmatmul.mubr.f32.gmra.mrb[30].mxu1 %v4797_v56  ;;  %2251 = vmatmul.mubr.f32.gmra.mrb[32].mxu0 %v4004_v46  ;;  %v4800_v46 = vld [vmem:[#allocation25_spill] sm:$0xff] }
 0x15d   : > { %1292 = vmatprep.mubr.f32.mxu1 %v4758_v51  ;;  %2256 = vmatprep.mubr.f32.mxu0 %v4758_v51 }
 0x160   : > { %1295 = vmatmul.mubr.f32.gmra.mrb[32].mxu1 %v4798_v14  ;;  %2258 = vmatmul.mubr.f32.gmra.mrb[34].mxu0 %v4018_v12  ;;  %v4801_v12 = vld [vmem:[#allocation27_spill] sm:$0xff] }
 0x161   : > { %1300 = vmatprep.mubr.f32.mxu1 %v4758_v51  ;;  %2263 = vmatprep.mubr.f32.mxu0 %v4758_v51 }
 0x164   : > { %1303 = vmatmul.mubr.f32.gmra.mrb[34].mxu1 %v4799_v37  ;;  %2265 = vmatmul.mubr.f32.gmra.mrb[36].mxu0 %v4039_v55  ;;  %v4802_v55 = vld [vmem:[#allocation29_spill] sm:$0xff] }
 0x165   : > { %1308 = vmatprep.mubr.f32.mxu1 %v4758_v51  ;;  %2270 = vmatprep.mubr.f32.mxu0 %v4758_v51 }
 0x168   : > { %1311 = vmatmul.mubr.f32.gmra.mrb[36].mxu1 %v4800_v46  ;;  %2272 = vmatmul.mubr.f32.gmra.mrb[38].mxu0 %v4046_v49  ;;  %v4803_v49 = vld [vmem:[#allocation31_spill] sm:$0xff] }
 0x169   : > { %1316 = vmatprep.mubr.f32.mxu1 %v4758_v51  ;;  %2277 = vmatprep.mubr.f32.mxu0 %v4758_v51 }
 0x16c   : > { %1319 = vmatmul.mubr.f32.gmra.mrb[38].mxu1 %v4801_v12  ;;  %2279 = vmatmul.mubr.f32.gmra.mrb[40].mxu0 %v4060_v16  ;;  %v4804_v16 = vld [vmem:[#allocation33_spill] sm:$0xff] }
 0x16d   : > { %1324 = vmatprep.mubr.f32.mxu1 %v4758_v51  ;;  %2284 = vmatprep.mubr.f32.mxu0 %v4758_v51 }
 0x170   : > { %1327 = vmatmul.mubr.f32.gmra.mrb[40].mxu1 %v4802_v55  ;;  %2286 = vmatmul.mubr.f32.gmra.mrb[42].mxu0 %v4079_v32  ;;  %v4805_v32 = vld [vmem:[#allocation35_spill] sm:$0xff] }
 0x171   : > { %1332 = vmatprep.mubr.f32.mxu1 %v4758_v51  ;;  %2291 = vmatprep.mubr.f32.mxu0 %v4758_v51 }
 0x174   : > { %1335 = vmatmul.mubr.f32.gmra.mrb[42].mxu1 %v4803_v49  ;;  %2293 = vmatmul.mubr.f32.gmra.mrb[44].mxu0 %v4093_v33  ;;  %v4806_v33 = vld [vmem:[#allocation36_spill] sm:$0xff] }
 0x175   : > { %1340 = vmatprep.mubr.f32.mxu1 %v4758_v51  ;;  %2298 = vmatprep.mubr.f32.mxu0 %v4758_v51 }
 0x178   : > { %1343 = vmatmul.mubr.f32.gmra.mrb[44].mxu1 %v4804_v16  ;;  %2300 = vmatmul.mubr.f32.gmra.mrb[46].mxu0 %v4109_v2  ;;  %v4807_v2 = vld [vmem:[#allocation37_spill] sm:$0xff] }
 0x179   : > { %1348 = vmatprep.mubr.f32.mxu1 %v4758_v51  ;;  %2305 = vmatprep.mubr.f32.mxu0 %v4758_v51 }
 0x17c   : > { %1351 = vmatmul.mubr.f32.gmra.mrb[46].mxu1 %v4805_v32  ;;  %2307 = vmatmul.mubr.f32.gmra.mrb[48].mxu0 %v4116_v35  ;;  %v4808_v35 = vld [vmem:[#allocation38_spill] sm:$0xff] }
 0x17d   : > { %1356 = vmatprep.mubr.f32.mxu1 %v4758_v51  ;;  %2312 = vmatprep.mubr.f32.mxu0 %v4758_v51 }
 0x180   : > { %1359 = vmatmul.mubr.f32.gmra.mrb[48].mxu1 %v4806_v33  ;;  %2314 = vmatmul.mubr.f32.gmra.mrb[50].mxu0 %v4128_v44  ;;  %v4809_v44 = vld [vmem:[#allocation39_spill] sm:$0xff] }
 0x181   : > { %1364 = vmatprep.mubr.f32.mxu1 %v4758_v51  ;;  %2319 = vmatprep.mubr.f32.mxu0 %v4758_v51 }
 0x184   : > { %1367 = vmatmul.mubr.f32.gmra.mrb[50].mxu1 %v4807_v2  ;;  %2321 = vmatmul.mubr.f32.gmra.mrb[52].mxu0 %v4145_v34 }
 0x185   : > { %1372 = vmatprep.mubr.f32.mxu1 %v4758_v51  ;;  %2326 = vmatprep.mubr.f32.mxu0 %v4758_v51 }
 0x188   : > { %1375 = vmatmul.mubr.f32.gmra.mrb[52].mxu1 %v4808_v35  ;;  %2328 = vmatmul.mubr.f32.gmra.mrb[54].mxu0 %v4150_v48 }
 0x189   : > { %1380 = vmatprep.mubr.f32.mxu1 %v4758_v51  ;;  %2333 = vmatprep.mubr.f32.mxu0 %v4758_v51 }
 0x18c   : > { %1383 = vmatmul.mubr.f32.gmra.mrb[54].mxu1 %v4809_v44  ;;  %2335 = vmatmul.mubr.f32.gmra.mrb[56].mxu0 %v4164_v36 }
 0x18d   : > { %1388 = vmatprep.mubr.f32.mxu1 %v4758_v51  ;;  %2340 = vmatprep.mubr.f32.mxu0 %v4758_v51 }
 0x190   : > { %1391 = vmatmul.mubr.f32.gmra.mrb[56].mxu1 %v4177_v7  ;;  %2342 = vmatmul.mubr.f32.gmra.mrb[58].mxu0 %v4172_v30 }
 0x191   : > { %1396 = vmatprep.mubr.f32.mxu1 %v4758_v51  ;;  %2347 = vmatprep.mubr.f32.mxu0 %v4758_v51 }
 0x194   : > { %1399 = vmatmul.mubr.f32.gmra.mrb[58].mxu1 %v4184_v21  ;;  %2349 = vmatmul.mubr.f32.gmra.mrb[60].mxu0 %v4188_v0 }
 0x195   : > { %1404 = vmatprep.mubr.f32.mxu1 %v4758_v51  ;;  %2354 = vmatprep.mubr.f32.mxu0 %v4758_v51 }
 0x198   : > { %1407 = vmatmul.mubr.f32.gmra.mrb[60].mxu1 %v4196_v6  ;;  %2356 = vmatmul.mubr.f32.gmra.mrb[62].mxu0 %v4198_v60 }
 0x199   : > { %1412 = vmatprep.mubr.f32.mxu1 %v4758_v51 }
 0x19c   : > { %1415 = vmatmul.mubr.f32.gmra.mrb[62].mxu1 %v4205_v27 }
 0x1ef   : > { %v2140_v30 = vpop.f32.mrb[0].mxu0 }
 0x1f0   : > { %v2142_v34 = vpop.f32.mrb[1].mxu0 }
 0x1f3   : > { %v1168_v48 = vpop.f32.mrb[0].mxu1  ;;  %v2147_v36 = vpop.f32.mrb[2].mxu0 }
 0x1f4   : > { %v3289_v7 = vadd.f32 %v2140_v30, %v1168_v48  ;;  %v1170_v21 = vpop.f32.mrb[1].mxu1  ;;  %v2149_v45 = vpop.f32.mrb[3].mxu0 }
 0x1f5   : > { %v3290_v0 = vadd.f32 %v2142_v34, %v1170_v21 }
 0x1f7   : > { %v1176_v53 = vpop.f32.mrb[2].mxu1  ;;  %v2154_v63 = vpop.f32.mrb[4].mxu0  ;;  %v2371_v62 = vmin.f32 %v3289_v7, %v3290_v0 }
 0x1f8   : > { %v3291_v29 = vadd.f32 %v2147_v36, %v1176_v53  ;;  %v1178_v6 = vpop.f32.mrb[3].mxu1  ;;  %v2156_v60 = vpop.f32.mrb[5].mxu0 }
 0x1f9   : > { %v3292_v25 = vadd.f32 %v2149_v45, %v1178_v6  ;;  %2372 = vmin.xlane.f32.xlu0 %v2371_v62 }
 0x1fb   : > { %v1184_v50 = vpop.f32.mrb[4].mxu1  ;;  %v2161_v27 = vpop.f32.mrb[6].mxu0  ;;  %v2374_v42 = vmin.f32 %v3291_v29, %v3292_v25 }
 0x1fc   : > { %v3293_v5 = vadd.f32 %v2154_v63, %v1184_v50  ;;  %v1186_v10 = vpop.f32.mrb[5].mxu1  ;;  %v2163_v57 = vpop.f32.mrb[7].mxu0 }
 0x1fd   : > { %v3294_v11 = vadd.f32 %v2156_v60, %v1186_v10  ;;  %2375 = vmin.xlane.f32.xlu0 %v2374_v42 }
 0x1fe   : > { %v2967_v8 = vmin.f32 %v3289_v7, %v3293_v5 }
 0x1ff   : > { %v3004_v47 = vmin.f32 %v3290_v0, %v3294_v11  ;;  %v1192_v31 = vpop.f32.mrb[6].mxu1  ;;  %v2168_v4 = vpop.f32.mrb[8].mxu0  ;;  %v2377_v19 = vmin.f32 %v3293_v5, %v3294_v11 }
 0x200   : > { %v3295_v15 = vadd.f32 %v2161_v27, %v1192_v31  ;;  %v1194_v18 = vpop.f32.mrb[7].mxu1  ;;  %v2170_v58 = vpop.f32.mrb[9].mxu0 }
 0x201   : > { %v3296_v41 = vadd.f32 %v2163_v57, %v1194_v18  ;;  %2378 = vmin.xlane.f32.xlu1 %v2377_v19 }
 0x202   : > { %v2968_v28 = vmin.f32 %v3291_v29, %v3295_v15 }
 0x203   : > { %v3005_v24 = vmin.f32 %v3292_v25, %v3296_v41  ;;  %v1200_v22 = vpop.f32.mrb[8].mxu1  ;;  %v2175_v23 = vpop.f32.mrb[10].mxu0  ;;  %v2380_v52 = vmin.f32 %v3295_v15, %v3296_v41 }
 0x204   : > { %v3297_v1 = vadd.f32 %v2168_v4, %v1200_v22  ;;  %v1202_v38 = vpop.f32.mrb[9].mxu1  ;;  %v2177_v59 = vpop.f32.mrb[11].mxu0 }
 0x205   : > { %v3298_v54 = vadd.f32 %v2170_v58, %v1202_v38  ;;  %2381 = vmin.xlane.f32.xlu1 %v2380_v52 }
 0x206   : > { %v2969_v61 = vmin.f32 %v2967_v8, %v3297_v1 }
 0x207   : > { %v3006_v17 = vmin.f32 %v3004_v47, %v3298_v54  ;;  %v1208_v20 = vpop.f32.mrb[10].mxu1  ;;  %v2182_v39 = vpop.f32.mrb[12].mxu0  ;;  %v2383_v43 = vmin.f32 %v3297_v1, %v3298_v54 }
 0x208   : > { %v3299_v56 = vadd.f32 %v2175_v23, %v1208_v20  ;;  %v1210_v14 = vpop.f32.mrb[11].mxu1  ;;  %v2184_v37 = vpop.f32.mrb[13].mxu0 }
 0x209   : > { %v3300_v46 = vadd.f32 %v2177_v59, %v1210_v14  ;;  %2384 = vmin.xlane.f32.xlu0 %v2383_v43 }
 0x20a   : > { %v2970_v12 = vmin.f32 %v2968_v28, %v3299_v56 }
 0x20b   : > { %v3007_v55 = vmin.f32 %v3005_v24, %v3300_v46  ;;  %v1216_v49 = vpop.f32.mrb[12].mxu1  ;;  %v2189_v16 = vpop.f32.mrb[14].mxu0  ;;  %v2386_v32 = vmin.f32 %v3299_v56, %v3300_v46 }
 0x20c   : > { %v3301_v33 = vadd.f32 %v2182_v39, %v1216_v49  ;;  %v1218_v2 = vpop.f32.mrb[13].mxu1  ;;  %v2191_v35 = vpop.f32.mrb[15].mxu0 }
 0x20d   : > { %v3302_v44 = vadd.f32 %v2184_v37, %v1218_v2  ;;  %2387 = vmin.xlane.f32.xlu1 %v2386_v32 }
 0x20e   : > { %v2971_v30 = vmin.f32 %v2969_v61, %v3301_v33 }
 0x20f   : > { %v3008_v34 = vmin.f32 %v3006_v17, %v3302_v44  ;;  %v1224_v48 = vpop.f32.mrb[14].mxu1  ;;  %v2196_v36 = vpop.f32.mrb[16].mxu0  ;;  %v2389_v7 = vmin.f32 %v3301_v33, %v3302_v44 }
 0x210   : > { %v3303_v21 = vadd.f32 %v2189_v16, %v1224_v48  ;;  %v1226_v45 = vpop.f32.mrb[15].mxu1  ;;  %v2198_v0 = vpop.f32.mrb[17].mxu0 }
 0x211   : > { %v3304_v53 = vadd.f32 %v2191_v35, %v1226_v45  ;;  %2390 = vmin.xlane.f32.xlu0 %v2389_v7 }
 0x212   : > { %v2972_v63 = vmin.f32 %v2970_v12, %v3303_v21 }
 0x213   : > { %v3009_v62 = vmin.f32 %v3007_v55, %v3304_v53  ;;  %v1232_v29 = vpop.f32.mrb[16].mxu1  ;;  %v2203_v6 = vpop.f32.mrb[18].mxu0  ;;  %v2392_v60 = vmin.f32 %v3303_v21, %v3304_v53 }
 0x214   : > { %v3305_v25 = vadd.f32 %v2196_v36, %v1232_v29  ;;  %v1234_v50 = vpop.f32.mrb[17].mxu1  ;;  %v2205_v27 = vpop.f32.mrb[19].mxu0 }
 0x215   : > { %v3306_v42 = vadd.f32 %v2198_v0, %v1234_v50  ;;  %2393 = vmin.xlane.f32.xlu1 %v2392_v60 }
 0x216   : > { %v2973_v5 = vmin.f32 %v2971_v30, %v3305_v25 }
 0x217   : > { %v3010_v10 = vmin.f32 %v3008_v34, %v3306_v42  ;;  %v1240_v57 = vpop.f32.mrb[18].mxu1  ;;  %v2210_v11 = vpop.f32.mrb[20].mxu0  ;;  %v2395_v8 = vmin.f32 %v3305_v25, %v3306_v42 }
 0x218   : > { %v3307_v9 = vadd.f32 %v2203_v6, %v1240_v57  ;;  %v1242_v40 = vpop.f32.mrb[19].mxu1  ;;  %v2212_v47 = vpop.f32.mrb[21].mxu0 }
 0x219   : > { %v3308_v31 = vadd.f32 %v2205_v27, %v1242_v40  ;;  %2396 = vmin.xlane.f32.xlu0 %v2395_v8 }
 0x21a   : > { %v2974_v4 = vmin.f32 %v2972_v63, %v3307_v9 }
 0x21b   : > { %v3011_v19 = vmin.f32 %v3009_v62, %v3308_v31  ;;  %v1248_v15 = vpop.f32.mrb[20].mxu1  ;;  %v2217_v18 = vpop.f32.mrb[22].mxu0  ;;  %v2398_v58 = vmin.f32 %v3307_v9, %v3308_v31 }
 0x21c   : > { %v3309_v41 = vadd.f32 %v2210_v11, %v1248_v15  ;;  %v1250_v28 = vpop.f32.mrb[21].mxu1  ;;  %v2219_v24 = vpop.f32.mrb[23].mxu0 }
 0x21d   : > { %v3310_v22 = vadd.f32 %v2212_v47, %v1250_v28  ;;  %2399 = vmin.xlane.f32.xlu1 %v2398_v58 }
 0x21e   : > { %v2975_v23 = vmin.f32 %v2973_v5, %v3309_v41 }
 0x21f   : > { %v3012_v52 = vmin.f32 %v3010_v10, %v3310_v22  ;;  %v1256_v1 = vpop.f32.mrb[22].mxu1  ;;  %v2224_v38 = vpop.f32.mrb[24].mxu0  ;;  %v2401_v59 = vmin.f32 %v3309_v41, %v3310_v22 }
 0x220   : > { %v3311_v54 = vadd.f32 %v2217_v18, %v1256_v1  ;;  %v1258_v61 = vpop.f32.mrb[23].mxu1  ;;  %v2226_v17 = vpop.f32.mrb[25].mxu0 }
 0x221   : > { %v3312_v20 = vadd.f32 %v2219_v24, %v1258_v61  ;;  %2402 = vmin.xlane.f32.xlu0 %v2401_v59 }
 0x222   : > { %v2976_v39 = vmin.f32 %v2974_v4, %v3311_v54 }
 0x223   : > { %v3013_v43 = vmin.f32 %v3011_v19, %v3312_v20  ;;  %v1264_v56 = vpop.f32.mrb[24].mxu1  ;;  %v2231_v14 = vpop.f32.mrb[26].mxu0  ;;  %v2404_v37 = vmin.f32 %v3311_v54, %v3312_v20 }
 0x224   : > { %v3313_v46 = vadd.f32 %v2224_v38, %v1264_v56  ;;  %v1266_v12 = vpop.f32.mrb[25].mxu1  ;;  %v2233_v55 = vpop.f32.mrb[27].mxu0 }
 0x225   : > { %v3314_v49 = vadd.f32 %v2226_v17, %v1266_v12  ;;  %2405 = vmin.xlane.f32.xlu0 %v2404_v37 }
 0x226   : > { %v2977_v16 = vmin.f32 %v2975_v23, %v3313_v46 }
 0x227   : > { %v3014_v32 = vmin.f32 %v3012_v52, %v3314_v49  ;;  %v1272_v33 = vpop.f32.mrb[26].mxu1  ;;  %v2238_v2 = vpop.f32.mrb[28].mxu0  ;;  %v2407_v35 = vmin.f32 %v3313_v46, %v3314_v49 }
 0x228   : > { %v3315_v44 = vadd.f32 %v2231_v14, %v1272_v33  ;;  %v1274_v30 = vpop.f32.mrb[27].mxu1  ;;  %v2240_v34 = vpop.f32.mrb[29].mxu0 }
 0x229   : > { %v3316_v48 = vadd.f32 %v2233_v55, %v1274_v30  ;;  %2408 = vmin.xlane.f32.xlu1 %v2407_v35 }
 0x22a   : > { %v2978_v36 = vmin.f32 %v2976_v39, %v3315_v44 }
 0x22b   : > { %v3015_v7 = vmin.f32 %v3013_v43, %v3316_v48  ;;  %v1280_v21 = vpop.f32.mrb[28].mxu1  ;;  %v2245_v45 = vpop.f32.mrb[30].mxu0  ;;  %v2410_v0 = vmin.f32 %v3315_v44, %v3316_v48 }
 0x22c   : > { %v3317_v53 = vadd.f32 %v2238_v2, %v1280_v21  ;;  %v1282_v63 = vpop.f32.mrb[29].mxu1  ;;  %v2247_v62 = vpop.f32.mrb[31].mxu0 }
 0x22d   : > { %v3318_v29 = vadd.f32 %v2240_v34, %v1282_v63  ;;  %2411 = vmin.xlane.f32.xlu0 %v2410_v0 }
 0x22e   : > { %v2979_v6 = vmin.f32 %v2977_v16, %v3317_v53 }
 0x22f   : > { %v3016_v60 = vmin.f32 %v3014_v32, %v3318_v29  ;;  %v1288_v25 = vpop.f32.mrb[30].mxu1  ;;  %v2252_v50 = vpop.f32.mrb[32].mxu0  ;;  %v2413_v27 = vmin.f32 %v3317_v53, %v3318_v29 }
 0x230   : > { %v3319_v42 = vadd.f32 %v2245_v45, %v1288_v25  ;;  %v1290_v5 = vpop.f32.mrb[31].mxu1  ;;  %v2254_v10 = vpop.f32.mrb[33].mxu0 }
 0x231   : > { %v3320_v57 = vadd.f32 %v2247_v62, %v1290_v5  ;;  %2414 = vmin.xlane.f32.xlu0 %v2413_v27  ;;  %v4554_v27 = vpop.permute.xlu0 %3646 }
 0x232   : > { %v2980_v11 = vmin.f32 %v2978_v36, %v3319_v42 }
 0x233   : > { %v3017_v8 = vmin.f32 %v3015_v7, %v3320_v57  ;;  %v1296_v9 = vpop.f32.mrb[32].mxu1  ;;  %v2259_v40 = vpop.f32.mrb[34].mxu0  ;;  %v2416_v47 = vmin.f32 %v3319_v42, %v3320_v57 }
 0x234   : > { %v3321_v31 = vadd.f32 %v2252_v50, %v1296_v9  ;;  %v1298_v4 = vpop.f32.mrb[33].mxu1  ;;  %v2261_v19 = vpop.f32.mrb[35].mxu0 }
 0x235   : > { %v3322_v15 = vadd.f32 %v2254_v10, %v1298_v4  ;;  %2417 = vmin.xlane.f32.xlu0 %v2416_v47 }
 0x236   : > { %v2981_v18 = vmin.f32 %v2979_v6, %v3321_v31 }
 0x237   : > { %v3018_v58 = vmin.f32 %v3016_v60, %v3322_v15  ;;  %v1304_v41 = vpop.f32.mrb[34].mxu1  ;;  %v2266_v28 = vpop.f32.mrb[36].mxu0  ;;  %v2419_v24 = vmin.f32 %v3321_v31, %v3322_v15 }
 0x238   : > { %v3323_v22 = vadd.f32 %v2259_v40, %v1304_v41  ;;  %v1306_v23 = vpop.f32.mrb[35].mxu1  ;;  %v2268_v52 = vpop.f32.mrb[37].mxu0 }
 0x239   : > { %v3324_v1 = vadd.f32 %v2261_v19, %v1306_v23  ;;  %2420 = vmin.xlane.f32.xlu1 %v2419_v24 }
 0x23a   : > { %v2982_v38 = vmin.f32 %v2980_v11, %v3323_v22 }
 0x23b   : > { %v3019_v59 = vmin.f32 %v3017_v8, %v3324_v1  ;;  %v1312_v54 = vpop.f32.mrb[36].mxu1  ;;  %v2273_v61 = vpop.f32.mrb[38].mxu0  ;;  %v2422_v17 = vmin.f32 %v3323_v22, %v3324_v1 }
 0x23c   : > { %v3325_v20 = vadd.f32 %v2266_v28, %v1312_v54  ;;  %v1314_v39 = vpop.f32.mrb[37].mxu1  ;;  %v2275_v43 = vpop.f32.mrb[39].mxu0 }
 0x23d   : > { %v3326_v56 = vadd.f32 %v2268_v52, %v1314_v39  ;;  %2423 = vmin.xlane.f32.xlu0 %v2422_v17  ;;  %v4556_v22 = vpop.permute.xlu0 %3656 }
 0x23e   : > { %v2983_v14 = vmin.f32 %v2981_v18, %v3325_v20 }
 0x23f   : > { %v3020_v37 = vmin.f32 %v3018_v58, %v3326_v56  ;;  %v1320_v46 = vpop.f32.mrb[38].mxu1  ;;  %v2280_v12 = vpop.f32.mrb[40].mxu0  ;;  %v2425_v55 = vmin.f32 %v3325_v20, %v3326_v56 }
 0x240   : > { %v3327_v49 = vadd.f32 %v2273_v61, %v1320_v46  ;;  %v1322_v16 = vpop.f32.mrb[39].mxu1  ;;  %v2282_v32 = vpop.f32.mrb[41].mxu0 }
 0x241   : > { %v3328_v33 = vadd.f32 %v2275_v43, %v1322_v16  ;;  %2426 = vmin.xlane.f32.xlu0 %v2425_v55  ;;  %v4558_v16 = vpop.permute.xlu0 %3666 }
 0x242   : > { %v2984_v2 = vmin.f32 %v2982_v38, %v3327_v49 }
 0x243   : > { %v3021_v35 = vmin.f32 %v3019_v59, %v3328_v33  ;;  %v1328_v44 = vpop.f32.mrb[40].mxu1  ;;  %v2287_v30 = vpop.f32.mrb[42].mxu0  ;;  %v2428_v34 = vmin.f32 %v3327_v49, %v3328_v33 }
 0x244   : > { %v3329_v48 = vadd.f32 %v2280_v12, %v1328_v44  ;;  %v1330_v36 = vpop.f32.mrb[41].mxu1  ;;  %v2289_v7 = vpop.f32.mrb[43].mxu0 }
 0x245   : > { %v3330_v21 = vadd.f32 %v2282_v32, %v1330_v36  ;;  %2429 = vmin.xlane.f32.xlu1 %v2428_v34 }
 0x246   : > { %v2985_v45 = vmin.f32 %v2983_v14, %v3329_v48 }
 0x247   : > { %v3022_v0 = vmin.f32 %v3020_v37, %v3330_v21  ;;  %v1336_v53 = vpop.f32.mrb[42].mxu1  ;;  %v2294_v63 = vpop.f32.mrb[44].mxu0  ;;  %v2431_v62 = vmin.f32 %v3329_v48, %v3330_v21 }
 0x248   : > { %v3331_v29 = vadd.f32 %v2287_v30, %v1336_v53  ;;  %v1338_v6 = vpop.f32.mrb[43].mxu1  ;;  %v2296_v60 = vpop.f32.mrb[45].mxu0 }
 0x249   : > { %v3332_v25 = vadd.f32 %v2289_v7, %v1338_v6  ;;  %2432 = vmin.xlane.f32.xlu0 %v2431_v62 }
 0x24a   : > { %v2986_v50 = vmin.f32 %v2984_v2, %v3331_v29 }
 0x24b   : > { %v3023_v42 = vmin.f32 %v3021_v35, %v3332_v25  ;;  %v1344_v5 = vpop.f32.mrb[44].mxu1  ;;  %v2301_v10 = vpop.f32.mrb[46].mxu0  ;;  %v2434_v57 = vmin.f32 %v3331_v29, %v3332_v25 }
 0x24c   : > { %v3333_v11 = vadd.f32 %v2294_v63, %v1344_v5  ;;  %v1346_v8 = vpop.f32.mrb[45].mxu1  ;;  %v2303_v9 = vpop.f32.mrb[47].mxu0 }
 0x24d   : > { %v3334_v40 = vadd.f32 %v2296_v60, %v1346_v8  ;;  %2435 = vmin.xlane.f32.xlu1 %v2434_v57  ;;  %v4560_v60 = vpop.permute.xlu0 %3676 }
 0x24e   : > { %v2987_v47 = vmin.f32 %v2985_v45, %v3333_v11 }
 0x24f   : > { %v3024_v31 = vmin.f32 %v3022_v0, %v3334_v40  ;;  %v1352_v4 = vpop.f32.mrb[46].mxu1  ;;  %v2308_v19 = vpop.f32.mrb[48].mxu0  ;;  %v2437_v15 = vmin.f32 %v3333_v11, %v3334_v40 }
 0x250   : > { %v3335_v18 = vadd.f32 %v2301_v10, %v1352_v4  ;;  %v1354_v58 = vpop.f32.mrb[47].mxu1  ;;  %v2310_v41 = vpop.f32.mrb[49].mxu0 }
 0x251   : > { %v3336_v28 = vadd.f32 %v2303_v9, %v1354_v58  ;;  %2438 = vmin.xlane.f32.xlu0 %v2437_v15 }
 0x252   : > { %v2988_v24 = vmin.f32 %v2986_v50, %v3335_v18 }
 0x253   : > { %v3025_v23 = vmin.f32 %v3023_v42, %v3336_v28  ;;  %v1360_v52 = vpop.f32.mrb[48].mxu1  ;;  %v2315_v1 = vpop.f32.mrb[50].mxu0  ;;  %v2440_v38 = vmin.f32 %v3335_v18, %v3336_v28 }
 0x254   : > { %v3337_v59 = vadd.f32 %v2308_v19, %v1360_v52  ;;  %v1362_v54 = vpop.f32.mrb[49].mxu1  ;;  %v2317_v61 = vpop.f32.mrb[51].mxu0 }
 0x255   : > { %v3338_v17 = vadd.f32 %v2310_v41, %v1362_v54  ;;  %2441 = vmin.xlane.f32.xlu1 %v2440_v38  ;;  %v4562_v41 = vpop.permute.xlu0 %3686 }
 0x256   : > { %v2989_v20 = vmin.f32 %v2987_v47, %v3337_v59 }
 0x257   : > { %v3026_v39 = vmin.f32 %v3024_v31, %v3338_v17  ;;  %v1368_v43 = vpop.f32.mrb[50].mxu1  ;;  %v2322_v56 = vpop.f32.mrb[52].mxu0  ;;  %v2443_v14 = vmin.f32 %v3337_v59, %v3338_v17 }
 0x258   : > { %v3339_v37 = vadd.f32 %v2315_v1, %v1368_v43  ;;  %v1370_v46 = vpop.f32.mrb[51].mxu1  ;;  %v2324_v12 = vpop.f32.mrb[53].mxu0 }
 0x259   : > { %v3340_v55 = vadd.f32 %v2317_v61, %v1370_v46  ;;  %2444 = vmin.xlane.f32.xlu0 %v2443_v14  ;;  %v4566_v14 = vpop.permute.xlu0 %2807 }
 0x25a   : > { %v2990_v49 = vmin.f32 %v2988_v24, %v3339_v37  ;;  %v4564_v24 = vpop.permute.xlu1 %3641 }
 0x25b   : > { %v3027_v32 = vmin.f32 %v3025_v23, %v3340_v55  ;;  %v1376_v33 = vpop.f32.mrb[52].mxu1  ;;  %v2329_v2 = vpop.f32.mrb[54].mxu0  ;;  %v2446_v35 = vmin.f32 %v3339_v37, %v3340_v55 }
 0x25c   : > { %v3341_v44 = vadd.f32 %v2322_v56, %v1376_v33  ;;  %v1378_v30 = vpop.f32.mrb[53].mxu1  ;;  %v2331_v34 = vpop.f32.mrb[55].mxu0  ;;  %v3056_v33 = vlaneseq }
 0x25d   : > { %v3342_v48 = vadd.f32 %v2324_v12, %v1378_v30  ;;  %2447 = vmin.xlane.f32.xlu1 %v2446_v35 }
 0x25e   : > { %v2991_v36 = vmin.f32 %v2989_v20, %v3341_v44  ;;  %v4568_v12 = vpop.permute.xlu1 %3651 }
 0x25f   : > { %v3028_v7 = vmin.f32 %v3026_v39, %v3342_v48  ;;  %v1384_v21 = vpop.f32.mrb[54].mxu1  ;;  %v2336_v45 = vpop.f32.mrb[56].mxu0  ;;  %v2449_v0 = vmin.f32 %v3341_v44, %v3342_v48 }
 0x260   : > { %v3343_v53 = vadd.f32 %v2329_v2, %v1384_v21  ;;  %v1386_v63 = vpop.f32.mrb[55].mxu1  ;;  %v2338_v62 = vpop.f32.mrb[57].mxu0 }
 0x261   : > { %v3344_v29 = vadd.f32 %v2331_v34, %v1386_v63  ;;  %2450 = vmin.xlane.f32.xlu0 %v2449_v0  ;;  %v4572_v21 = vpop.permute.xlu0 %2809 }
 0x262   : > { %v2992_v6 = vmin.f32 %v2990_v49, %v3343_v53  ;;  %v3732_v49 = vmov 1966171168  }
 0x263   : > { %v3029_v25 = vmin.f32 %v3027_v32, %v3344_v29  ;;  %v1392_v50 = vpop.f32.mrb[56].mxu1  ;;  %v2343_v42 = vpop.f32.mrb[58].mxu0  ;;  %v2452_v5 = vmin.f32 %v3343_v53, %v3344_v29  ;;  %v3054_v32 = vunpack.c.l.s4 %v3732_v49  ;;  %v3644_v49 = vunpack.i.h.bf16 %v4564_v24 }
 0x264   : > { %v3345_v10 = vadd.f32 %v2336_v45, %v1392_v50  ;;  %v1394_v57 = vpop.f32.mrb[57].mxu1  ;;  %v2345_v11 = vpop.f32.mrb[59].mxu0 }
 0x265   : > { %v3346_v8 = vadd.f32 %v2338_v62, %v1394_v57  ;;  %2453 = vmin.xlane.f32.xlu1 %v2452_v5  ;;  %v3055_v48 = vunpack.c.0.s8 %v3054_v32  ;;  %v4574_v45 = vpop.permute.xlu1 %3661  ;;  %v4577_v50 = vpop.permute.xlu0 %2811 }
 0x266   : > { %v2993_v9 = vmin.f32 %v2991_v36, %v3345_v10  ;;  %v4570_v36 = vshrl.u32 %v3056_v33, 7  ;;  %v3704_v33 = vld [vmem:[%s3780_s20 + $0xf0] sm:$0xff] }
 0x267   : > { %v3030_v40 = vmin.f32 %v3028_v7, %v3346_v8  ;;  %v1400_v47 = vpop.f32.mrb[58].mxu1  ;;  %v2350_v31 = vpop.f32.mrb[60].mxu0  ;;  %v2455_v4 = vmin.f32 %v3345_v10, %v3346_v8  ;;  %vm2664_vm2 = vcmp.lt.f32.partialorder %v3704_v33, 5e+29 }
 0x268   : > { %v3347_v19 = vadd.f32 %v2343_v42, %v1400_v47  ;;  %v1402_v15 = vpop.f32.mrb[59].mxu1  ;;  %v2352_v18 = vpop.f32.mrb[61].mxu0  ;;  %v3058_v62 = vsub.s32 %v3055_v48, %v4570_v36  ;;  %v3701_v47 = vld [vmem:[%s3780_s20 + $0xd8] sm:$0xff]  ;;  %v3281_v48 = vsel %vm2664_vm2, 1.0, %v4758_v51 }
 0x269   : > { %v3348_v58 = vadd.f32 %v2345_v11, %v1402_v15  ;;  %2456 = vmin.xlane.f32.xlu0 %v2455_v4  ;;  %v4579_v42 = vpop.permute.xlu1 %3671  ;;  %vm2661_vm14 = vcmp.lt.f32.partialorder %v3701_v47, 5e+29  ;;  %v3653_v47 = vunpack.i.l.bf16 %v4568_v12 }
 0x26a   : > { %v2994_v28 = vmin.f32 %v2992_v6, %v3347_v19  ;;  %v3093_v10 = vrot.slane %v3086_v3, %v3058_v62  ;;  %v3278_v26 = vsel %vm2661_vm14, 1.0, %v4758_v51 }
 0x26b   : > { %v3031_v23 = vmin.f32 %v3029_v25, %v3348_v58  ;;  %v1408_v52 = vpop.f32.mrb[60].mxu1  ;;  %v2357_v1 = vpop.f32.mrb[62].mxu0  ;;  %v2458_v38 = vmin.f32 %v3347_v19, %v3348_v58 }
 0x26c   : > { %v3349_v59 = vadd.f32 %v2350_v31, %v1408_v52  ;;  %v1410_v54 = vpop.f32.mrb[61].mxu1  ;;  %v2359_v61 = vpop.f32.mrb[63].mxu0  ;;  %v3094_v31 = vcombine.high %v3093_v10, %v3093_v10 }
 0x26d   : > { %v3350_v17 = vadd.f32 %v2352_v18, %v1410_v54  ;;  %2459 = vmin.xlane.f32.xlu1 %v2458_v38  ;;  %v4586_v19 = vpop.permute.xlu0 %2813  ;;  %v4588_v15 = vpop.permute.xlu1 %3681  ;;  %v3643_v38 = vunpack.i.l.bf16 %v4564_v24  ;;  %v3279_v54 = vsel %vm2662_vm15, 1.0, %v4758_v51  ;;  %v3705_v24 = vld [vmem:[%s3780_s20 + $0xf8] sm:$0xff] }
 0x26e   : > { %v2995_v20 = vmin.f32 %v2993_v9, %v3349_v59  ;;  %v3700_v9 = vld [vmem:[%s3780_s20 + $0xd0] sm:$0xff]  ;;  %vm2665_vm3 = vcmp.lt.f32.partialorder %v3705_v24, 5e+29  ;;  %v3664_v24 = vunpack.i.h.bf16 %v4574_v45 }
 0x26f   : > { %v3032_v39 = vmin.f32 %v3030_v40, %v3350_v17  ;;  %v1416_v43 = vpop.f32.mrb[62].mxu1  ;;  %v2461_v56 = vmin.f32 %v3349_v59, %v3350_v17  ;;  %vm2660_vm13 = vcmp.lt.f32.partialorder %v3700_v9, 5e+29  ;;  %v3703_v17 = vld [vmem:[%s3780_s20 + $0xe8] sm:$0xff] }
 0x270   : > { %v3351_v37 = vadd.f32 %v2357_v1, %v1416_v43  ;;  %v1418_v46 = vpop.f32.mrb[63].mxu1  ;;  %v3277_v58 = vsel %vm2660_vm13, 1.0, %v4758_v51  ;;  %vm2663_vm1 = vcmp.lt.f32.partialorder %v3703_v17, 5e+29 }
 0x271   : > { %v3352_v55 = vadd.f32 %v2359_v61, %v1418_v46  ;;  %2462 = vmin.xlane.f32.xlu0 %v2461_v56  ;;  %v4596_v59 = vpop.permute.xlu1 %3691 }
 0x272   : > { %v2996_v2 = vmin.f32 %v2994_v28, %v3351_v37  ;;  %v3101_v28 = vrot.slane %v3094_v31, %v3058_v62 }
 0x273   : > { %v3033_v35 = vmin.f32 %v3031_v23, %v3352_v55  ;;  %v2464_v44 = vmin.f32 %v3351_v37, %v3352_v55  ;;  %v3280_v55 = vsel %vm2663_vm1, 1.0, %v4758_v51 }
 0x274   : > { %v2997_v30 = vmin.f32 %v2995_v20, %v2996_v2 }
 0x275   : > { %v3034_v34 = vmin.f32 %v3032_v39, %v3033_v35  ;;  %2465 = vmin.xlane.f32.xlu1 %v2464_v44  ;;  %v3102_v39 = vcombine.high %v3101_v28, %v3101_v28 }
 0x276   : > { %v2998_v7 = vrot.slane %v2997_v30, 4 }
 0x277   : > { %v3035_v0 = vrot.slane %v3034_v34, 4 }
 0x278   : > { %v2999_v53 = vmin.f32 %v2997_v30, %v2998_v7 }
 0x279   : > { %v3036_v63 = vmin.f32 %v3034_v34, %v3035_v0  ;;  %v3648_v34 = vunpack.i.l.bf16 %v4554_v27 }
 0x27a   : > { %v3000_v29 = vrot.slane %v2999_v53, 2 }
 0x27b   : > { %v3037_v6 = vrot.slane %v3036_v63, 2 }
 0x27c   : > { %v3001_v25 = vmin.f32 %v2999_v53, %v3000_v29 }
 0x27d   : > { %v3038_v5 = vmin.f32 %v3036_v63, %v3037_v6 }
 0x27e   : > { %v3002_v57 = vrot.slane %v3001_v25, 1 }
 0x27f   : > { %v3039_v11 = vrot.slane %v3038_v5, 1 }
 0x280   : > { %v3003_v8 = vmin.f32 %v3001_v25, %v3002_v57  ;;  %v3282_v25 = vsel %vm2665_vm3, 1.0, %v4758_v51 }
 0x281   : > { %v3040_v40 = vmin.f32 %v3038_v5, %v3039_v11  ;;  %v3649_v5 = vunpack.i.h.bf16 %v4554_v27  ;;  %v3654_v27 = vunpack.i.h.bf16 %v4568_v12 }
 0x282   : > { %v3041_v4 = vmax.f32 %v3003_v8, 0.0 }
 0x283   : > { %v3042_v18 = vmax.f32 %v3040_v40, 0.0 }
 0x285   : > { %v3052_v3 = vcombine.low %v3041_v4, %v3042_v18 }
 0x286   : > { %v2373_v23 = vpop.xlane.xlu0 %2372  ;;  %2815 = vrot.lane.b32.xlu1 %v3277_v58, %s3731_s24 }
 0x287   : > { %v2467_v52 = vmax.f32 %v2373_v23, 0.0  ;;  %2817 = vrot.lane.b32.xlu0 %v3278_v26, %s3731_s24  ;;  %v3059_v1 = vrot.slane %v3052_v3, %v3058_v62 }
 0x289   : > { %v2566_v61 = vmin.f32 %v2467_v52, 3e+38  ;;  %v3066_v20 = vrot.slane %v3059_v1, %v3058_v62 }
 0x28a   : > { %v2376_v43 = vpop.xlane.xlu0 %2375 }
 0x28b   : > { %v2859_v56 = vmul.f32 %v3643_v38, %v2566_v61  ;;  %v2468_v37 = vmax.f32 %v2376_v43, 0.0  ;;  %2819 = vrot.lane.b32.xlu0 %v3279_v54, %s3731_s24  ;;  %v3068_v46 = vmin.f32 %v3066_v20, 3e+38  ;;  %v3658_v54 = vunpack.i.l.bf16 %v4556_v22 }
 0x28d   : > { %v2567_v32 = vmin.f32 %v2468_v37, 3e+38  ;;  %v4604_v2 = vmul.f32 %v3102_v39, %v3068_v46  ;;  %v2891_v7 = vsel %vm2598_vm0, %v2859_v56, 0.0  ;;  %v3659_v37 = vunpack.i.h.bf16 %v4556_v22 }
 0x28e   : > { %v2379_v35 = vpop.xlane.xlu1 %2378 }
 0x28f   : > { %v2860_v44 = vmul.f32 %v3644_v49, %v2567_v32  ;;  %v2469_v30 = vmax.f32 %v2379_v35, 0.0  ;;  %2821 = vrot.lane.b32.xlu0 %v3280_v55, %s3731_s24  ;;  %v3663_v35 = vunpack.i.l.bf16 %v4574_v45 }
 0x291   : > { %v2892_v0 = vsel %vm2598_vm0, %v2860_v44, 0.0  ;;  %v2568_v53 = vmin.f32 %v2469_v30, 3e+38 }
 0x292   : > { %v2893_v63 = vadd.f32 %v2892_v0, %v2891_v7  ;;  %v2382_v62 = vpop.xlane.xlu1 %2381 }
 0x293   : > { %v2861_v29 = vmul.f32 %v3648_v34, %v2568_v53  ;;  %v2470_v6 = vmax.f32 %v2382_v62, 0.0  ;;  %2823 = vrot.lane.b32.xlu0 %v3281_v48, %s3731_s24  ;;  %v3108_v34 = vsub.s32 0, %v4570_v36  ;;  %v3112_v48 = vsub.s32 1, %v4570_v36 }
 0x294   : > { %v3668_v36 = vunpack.i.l.bf16 %v4558_v16 }
 0x295   : > { %v2894_v10 = vsel %vm2598_vm0, %v2861_v29, 0.0  ;;  %v2569_v57 = vmin.f32 %v2470_v6, 3e+38  ;;  %v3109_v29 = vrot.slane %v4604_v2, %v3108_v34  ;;  %v3113_v6 = vrot.slane %v4604_v2, %v3112_v48 }
 0x296   : > { %v2895_v11 = vadd.f32 %v2894_v10, %v2893_v63  ;;  %v2385_v8 = vpop.xlane.xlu0 %2384 }
 0x297   : > { %v2862_v9 = vmul.f32 %v3649_v5, %v2569_v57  ;;  %v2471_v40 = vmax.f32 %v2385_v8, 0.0  ;;  %2825 = vrot.lane.b32.xlu0 %v3282_v25, %s3731_s24 }
 0x299   : > { %v2896_v31 = vsel %vm2598_vm0, %v2862_v9, 0.0  ;;  %v2570_v4 = vmin.f32 %v2471_v40, 3e+38  ;;  %v3117_v9 = vsel %vm3116_vm4, %v3109_v29, 0.0  ;;  %v3118_v40 = vsel %vm3116_vm4, %v3113_v6, 0.0 }
 0x29a   : > { %v2897_v18 = vadd.f32 %v2896_v31, %v2895_v11  ;;  %v2388_v58 = vpop.xlane.xlu1 %2387 }
 0x29b   : > { %v2863_v26 = vmul.f32 %v3653_v47, %v2570_v4  ;;  %v2472_v13 = vmax.f32 %v2388_v58, 0.0  ;;  %v3669_v58 = vunpack.i.h.bf16 %v4558_v16 }
 0x29d   : > { %v2898_v3 = vsel %vm2598_vm0, %v2863_v26, 0.0  ;;  %v2571_v28 = vmin.f32 %v2472_v13, 3e+38 }
 0x29e   : > { %v2899_v23 = vadd.f32 %v2898_v3, %v2897_v18  ;;  %v2391_v52 = vpop.xlane.xlu0 %2390  ;;  %v3119_v18 = vadd.f32 %v3118_v40, %v3117_v9  ;;  %v3688_v9 = vunpack.i.l.bf16 %v4562_v41 }
 0x29f   : > { %v2864_v1 = vmul.f32 %v3654_v27, %v2571_v28  ;;  %v2473_v38 = vmax.f32 %v2391_v52, 0.0 }
 0x2a1   : > { %v2900_v61 = vsel %vm2598_vm0, %v2864_v1, 0.0  ;;  %v2572_v17 = vmin.f32 %v2473_v38, 3e+38 }
 0x2a2   : > { %v2901_v20 = vadd.f32 %v2900_v61, %v2899_v23  ;;  %v2394_v39 = vpop.xlane.xlu1 %2393  ;;  %v3673_v23 = vunpack.i.l.bf16 %v4579_v42 }
 0x2a3   : > { %v2865_v43 = vmul.f32 %v3658_v54, %v2572_v17  ;;  %v2474_v56 = vmax.f32 %v2394_v39, 0.0 }
 0x2a5   : > { %v2902_v12 = vsel %vm2598_vm0, %v2865_v43, 0.0  ;;  %v2573_v46 = vmin.f32 %v2474_v56, 3e+38 }
 0x2a6   : > { %v2903_v55 = vadd.f32 %v2902_v12, %v2901_v20  ;;  %v2397_v49 = vpop.xlane.xlu0 %2396  ;;  %v3674_v20 = vunpack.i.h.bf16 %v4579_v42 }
 0x2a7   : > { %v2866_v32 = vmul.f32 %v3659_v37, %v2573_v46  ;;  %v2475_v33 = vmax.f32 %v2397_v49, 0.0  ;;  %v3678_v46 = vunpack.i.l.bf16 %v4560_v60 }
 0x2a9   : > { %v2904_v44 = vsel %vm2598_vm0, %v2866_v32, 0.0  ;;  %v2574_v30 = vmin.f32 %v2475_v33, 3e+38 }
 0x2aa   : > { %v2905_v7 = vadd.f32 %v2904_v44, %v2903_v55  ;;  %v2400_v0 = vpop.xlane.xlu1 %2399 }
 0x2ab   : > { %v2867_v53 = vmul.f32 %v3663_v35, %v2574_v30  ;;  %v2476_v22 = vmax.f32 %v2400_v0, 0.0  ;;  %v3679_v30 = vunpack.i.h.bf16 %v4560_v60 }
 0x2ad   : > { %v2906_v63 = vsel %vm2598_vm0, %v2867_v53, 0.0  ;;  %v2575_v62 = vmin.f32 %v2476_v22, 3e+38  ;;  %v3683_v22 = vunpack.i.l.bf16 %v4588_v15 }
 0x2ae   : > { %v2907_v25 = vadd.f32 %v2906_v63, %v2905_v7  ;;  %v2403_v5 = vpop.xlane.xlu0 %2402 }
 0x2af   : > { %v2868_v10 = vmul.f32 %v3664_v24, %v2575_v62  ;;  %v2477_v57 = vmax.f32 %v2403_v5, 0.0  ;;  %v3684_v5 = vunpack.i.h.bf16 %v4588_v15 }
 0x2b1   : > { %v2908_v11 = vsel %vm2598_vm0, %v2868_v10, 0.0  ;;  %v2576_v8 = vmin.f32 %v2477_v57, 3e+38 }
 0x2b2   : > { %v2909_v45 = vadd.f32 %v2908_v11, %v2907_v25  ;;  %v2406_v47 = vpop.xlane.xlu0 %2405 }
 0x2b3   : > { %v2869_v31 = vmul.f32 %v3668_v36, %v2576_v8  ;;  %v2478_v4 = vmax.f32 %v2406_v47, 0.0 }
 0x2b5   : > { %v2910_v2 = vsel %vm2598_vm0, %v2869_v31, 0.0  ;;  %v2577_v26 = vmin.f32 %v2478_v4, 3e+38 }
 0x2b6   : > { %v2911_v13 = vadd.f32 %v2910_v2, %v2909_v45  ;;  %v2409_v27 = vpop.xlane.xlu1 %2408  ;;  %3120 = vadd.xlane.f32.xlu0 %v3119_v18 }
 0x2b7   : > { %v2870_v3 = vmul.f32 %v3669_v58, %v2577_v26  ;;  %v2479_v28 = vmax.f32 %v2409_v27, 0.0  ;;  %v3689_v58 = vunpack.i.h.bf16 %v4562_v41 }
 0x2b9   : > { %v2912_v52 = vsel %vm2598_vm0, %v2870_v3, 0.0  ;;  %v2578_v1 = vmin.f32 %v2479_v28, 3e+38 }
 0x2ba   : > { %v2913_v38 = vadd.f32 %v2912_v52, %v2911_v13  ;;  %v2412_v54 = vpop.xlane.xlu0 %2411 }
 0x2bb   : > { %v2871_v61 = vmul.f32 %v3673_v23, %v2578_v1  ;;  %v2480_v17 = vmax.f32 %v2412_v54, 0.0 }
 0x2bd   : > { %v2914_v16 = vsel %vm2598_vm0, %v2871_v61, 0.0  ;;  %v2579_v39 = vmin.f32 %v2480_v17, 3e+38 }
 0x2be   : > { %v2915_v43 = vadd.f32 %v2914_v16, %v2913_v38  ;;  %v2415_v56 = vpop.xlane.xlu0 %2414 }
 0x2bf   : > { %v2872_v37 = vmul.f32 %v3674_v20, %v2579_v39  ;;  %v2481_v12 = vmax.f32 %v2415_v56, 0.0 }
 0x2c1   : > { %v2916_v55 = vsel %vm2598_vm0, %v2872_v37, 0.0  ;;  %v2580_v49 = vmin.f32 %v2481_v12, 3e+38 }
 0x2c2   : > { %v2917_v32 = vadd.f32 %v2916_v55, %v2915_v43  ;;  %v2418_v33 = vpop.xlane.xlu0 %2417 }
 0x2c3   : > { %v2873_v35 = vmul.f32 %v3678_v46, %v2580_v49  ;;  %v2482_v44 = vmax.f32 %v2418_v33, 0.0 }
 0x2c5   : > { %v2918_v42 = vsel %vm2598_vm0, %v2873_v35, 0.0  ;;  %v2581_v34 = vmin.f32 %v2482_v44, 3e+38 }
 0x2c6   : > { %v2919_v48 = vadd.f32 %v2918_v42, %v2917_v32  ;;  %v2421_v7 = vpop.xlane.xlu1 %2420 }
 0x2c7   : > { %v2874_v0 = vmul.f32 %v3679_v30, %v2581_v34  ;;  %v2483_v53 = vmax.f32 %v2421_v7, 0.0  ;;  %v3693_v30 = vunpack.i.l.bf16 %v4596_v59 }
 0x2c9   : > { %v2920_v24 = vsel %vm2598_vm0, %v2874_v0, 0.0  ;;  %v2582_v63 = vmin.f32 %v2483_v53, 3e+38 }
 0x2ca   : > { %v2921_v62 = vadd.f32 %v2920_v24, %v2919_v48  ;;  %v2424_v29 = vpop.xlane.xlu0 %2423  ;;  %v3694_v48 = vunpack.i.h.bf16 %v4596_v59 }
 0x2cb   : > { %v2875_v6 = vmul.f32 %v3683_v22, %v2582_v63  ;;  %v2484_v25 = vmax.f32 %v2424_v29, 0.0 }
 0x2cd   : > { %v2922_v60 = vsel %vm2598_vm0, %v2875_v6, 0.0  ;;  %v2583_v10 = vmin.f32 %v2484_v25, 3e+38 }
 0x2ce   : > { %v2923_v57 = vadd.f32 %v2922_v60, %v2921_v62  ;;  %v2427_v36 = vpop.xlane.xlu0 %2426 }
 0x2cf   : > { %v2876_v11 = vmul.f32 %v3684_v5, %v2583_v10  ;;  %v2485_v8 = vmax.f32 %v2427_v36, 0.0 }
 0x2d1   : > { %v2924_v40 = vsel %vm2598_vm0, %v2876_v11, 0.0  ;;  %v2584_v45 = vmin.f32 %v2485_v8, 3e+38 }
 0x2d2   : > { %v2925_v47 = vadd.f32 %v2924_v40, %v2923_v57  ;;  %v2430_v31 = vpop.xlane.xlu1 %2429 }
 0x2d3   : > { %v2877_v4 = vmul.f32 %v3688_v9, %v2584_v45  ;;  %v2486_v18 = vmax.f32 %v2430_v31, 0.0 }
 0x2d5   : > { %v2926_v15 = vsel %vm2598_vm0, %v2877_v4, 0.0  ;;  %v2585_v2 = vmin.f32 %v2486_v18, 3e+38 }
 0x2d6   : > { %v2927_v26 = vadd.f32 %v2926_v15, %v2925_v47  ;;  %v2433_v13 = vpop.xlane.xlu0 %2432 }
 0x2d7   : > { %v2878_v27 = vmul.f32 %v3689_v58, %v2585_v2  ;;  %v2487_v3 = vmax.f32 %v2433_v13, 0.0 }
 0x2d9   : > { %v2928_v28 = vsel %vm2598_vm0, %v2878_v27, 0.0  ;;  %v2586_v23 = vmin.f32 %v2487_v3, 3e+38 }
 0x2da   : > { %v2929_v52 = vadd.f32 %v2928_v28, %v2927_v26  ;;  %v2436_v1 = vpop.xlane.xlu1 %2435 }
 0x2db   : > { %v2488_v38 = vmax.f32 %v2436_v1, 0.0  ;;  %v2879_v7 = vmul.f32 %v3693_v30, %v2586_v23 }
 0x2dd   : > { %v2587_v54 = vmin.f32 %v2488_v38, 3e+38  ;;  %v2930_v63 = vsel %vm2598_vm0, %v2879_v7, 0.0 }
 0x2de   : > { %v2439_v61 = vpop.xlane.xlu0 %2438  ;;  %v2931_v60 = vadd.f32 %v2930_v63, %v2929_v52  ;;  %v3083_v63 = vld [vmem:[%s246_s30] sm:$0x1] }
 0x2df   : > { %v2489_v17 = vmax.f32 %v2439_v61, 0.0  ;;  %v2880_v53 = vmul.f32 %v3694_v48, %v2587_v54 }
 0x2e1   : > { %v2588_v20 = vmin.f32 %v2489_v17, 3e+38  ;;  %v2932_v6 = vsel %vm2598_vm0, %v2880_v53, 0.0 }
 0x2e2   : > { %v2442_v16 = vpop.xlane.xlu1 %2441  ;;  %v2933_v11 = vadd.f32 %v2932_v6, %v2931_v60 }
 0x2e3   : > { %v2490_v39 = vmax.f32 %v2442_v16, 0.0  ;;  %v2881_v62 = vmul.f32 %v4566_v14, %v2588_v20 }
 0x2e5   : > { %v2589_v41 = vmin.f32 %v2490_v39, 3e+38  ;;  %v2934_v57 = vsel %vm2598_vm0, %v2881_v62, 0.0 }
 0x2e6   : > { %v2445_v43 = vpop.xlane.xlu0 %2444  ;;  %v2935_v14 = vadd.f32 %v2934_v57, %v2933_v11 }
 0x2e7   : > { %v2491_v56 = vmax.f32 %v2445_v43, 0.0  ;;  %v2882_v25 = vmul.f32 %v4572_v21, %v2589_v41 }
 0x2e9   : > { %v2590_v37 = vmin.f32 %v2491_v56, 3e+38  ;;  %v2936_v8 = vsel %vm2598_vm0, %v2882_v25, 0.0 }
 0x2ea   : > { %v2448_v12 = vpop.xlane.xlu1 %2447  ;;  %v2937_v4 = vadd.f32 %v2936_v8, %v2935_v14 }
 0x2eb   : > { %v2492_v46 = vmax.f32 %v2448_v12, 0.0  ;;  %v2883_v59 = vmul.f32 %v4577_v50, %v2590_v37 }
 0x2ed   : > { %v2591_v55 = vmin.f32 %v2492_v46, 3e+38  ;;  %v2938_v31 = vsel %vm2598_vm0, %v2883_v59, 0.0 }
 0x2ee   : > { %v2451_v49 = vpop.xlane.xlu0 %2450  ;;  %v2939_v15 = vadd.f32 %v2938_v31, %v2937_v4 }
 0x2ef   : > { %v2493_v32 = vmax.f32 %v2451_v49, 0.0  ;;  %v2884_v9 = vmul.f32 %v4586_v19, %v2591_v55 }
 0x2f1   : > { %v2592_v33 = vmin.f32 %v2493_v32, 3e+38  ;;  %v2940_v18 = vsel %vm2598_vm0, %v2884_v9, 0.0 }
 0x2f2   : > { %v2454_v35 = vpop.xlane.xlu1 %2453  ;;  %v2941_v27 = vadd.f32 %v2940_v18, %v2939_v15 }
 0x2f3   : > { %v2494_v44 = vmax.f32 %v2454_v35, 0.0 }
 0x2f5   : > { %v2593_v42 = vmin.f32 %v2494_v44, 3e+38 }
 0x2f6   : > { %v2457_v34 = vpop.xlane.xlu0 %2456 }
 0x2f7   : > { %v2495_v0 = vmax.f32 %v2457_v34, 0.0 }
 0x2f9   : > { %v2594_v22 = vmin.f32 %v2495_v0, 3e+38 }
 0x2fa   : > { %v2460_v24 = vpop.xlane.xlu1 %2459 }
 0x2fb   : > { %v2496_v29 = vmax.f32 %v2460_v24, 0.0  ;;  %v2730_v24 = vld [vmem:[%s243_s27] sm:$0x1] }
 0x2fd   : > { %v2595_v5 = vmin.f32 %v2496_v29, 3e+38 }
 0x2fe   : > { %v2463_v10 = vpop.xlane.xlu0 %2462 }
 0x2ff   : > { %v2497_v36 = vmax.f32 %v2463_v10, 0.0 }
 0x301   : > { %v2596_v40 = vmin.f32 %v2497_v36, 3e+38 }
 0x302   : > { %v2818_v45 = vpop.permute.xlu0 %2817  ;;  %v2466_v47 = vpop.xlane.xlu1 %2465 }
 0x303   : > { %v2498_v21 = vmax.f32 %v2466_v47, 0.0  ;;  %v2886_v26 = vmul.f32 %v2818_v45, %v2593_v42 }
 0x305   : > { %v2597_v58 = vmin.f32 %v2498_v21, 3e+38  ;;  %v2944_v52 = vsel %vm2598_vm0, %v2886_v26, 0.0 }
 0x306   : > { %v2820_v2 = vpop.permute.xlu0 %2819  ;;  %v2816_v50 = vpop.permute.xlu1 %2815 }
 0x307   : > { %v2885_v13 = vmul.f32 %v2816_v50, %v2592_v33  ;;  %v2887_v3 = vmul.f32 %v2820_v2, %v2594_v22 }
 0x309   : > { %v2942_v19 = vsel %vm2598_vm0, %v2885_v13, 0.0  ;;  %v2946_v54 = vsel %vm2598_vm0, %v2887_v3, 0.0 }
 0x30a   : > { %v2943_v28 = vadd.f32 %v2942_v19, %v2941_v27  ;;  %v2822_v23 = vpop.permute.xlu0 %2821 }
 0x30b   : > { %v2888_v1 = vmul.f32 %v2822_v23, %v2595_v5 }
 0x30c   : > { %v2945_v38 = vadd.f32 %v2944_v52, %v2943_v28 }
 0x30d   : > { %v2948_v20 = vsel %vm2598_vm0, %v2888_v1, 0.0 }
 0x30e   : > { %v2947_v61 = vadd.f32 %v2946_v54, %v2945_v38  ;;  %v2824_v17 = vpop.permute.xlu0 %2823 }
 0x30f   : > { %v2889_v16 = vmul.f32 %v2824_v17, %v2596_v40 }
 0x310   : > { %v2949_v39 = vadd.f32 %v2948_v20, %v2947_v61 }
 0x311   : > { %v2950_v41 = vsel %vm2598_vm0, %v2889_v16, 0.0 }
 0x312   : > { %v2826_v43 = vpop.permute.xlu0 %2825  ;;  %v2951_v37 = vadd.f32 %v2950_v41, %v2949_v39 }
 0x313   : > { %v2890_v56 = vmul.f32 %v2826_v43, %v2597_v58 }
 0x315   : > { %v2952_v12 = vsel %vm2598_vm0, %v2890_v56, 0.0 }
 0x316   : > { %v2953_v46 = vadd.f32 %v2952_v12, %v2951_v37 }
 0x318   : > { %2954 = vadd.xlane.f32.xlu1 %v2953_v46 }
 0x343   : > { %v3121_v55 = vpop.xlane.xlu0 %3120 }
 0x344   : > { %v3122_v49 = vrot.slane %v3121_v55, 4 }
 0x346   : > { %v3123_v32 = vadd.f32 %v3122_v49, %v3121_v55 }
 0x348   : > { %v3124_v33 = vrot.slane %v3123_v32, 2 }
 0x34a   : > { %v3125_v42 = vadd.f32 %v3124_v33, %v3123_v32 }
 0x34c   : > { %v3126_v7 = vrot.slane %v3125_v42, 1 }
 0x34e   : > { %v3127_v22 = vadd.f32 %v3126_v7, %v3125_v42 }
 0x3a5   : > { %v2955_v35 = vpop.xlane.xlu1 %2954 }
 0x3a6   : > { %v2956_v44 = vrot.slane %v2955_v35, 4 }
 0x3a8   : > { %v2957_v30 = vadd.f32 %v2956_v44, %v2955_v35 }
 0x3aa   : > { %v2958_v34 = vrot.slane %v2957_v30, 2 }
 0x3ac   : > { %v2959_v48 = vadd.f32 %v2958_v34, %v2957_v30 }
 0x3ae   : > { %v2960_v0 = vrot.slane %v2959_v48, 1 }
 0x3b0   : > { %v2961_v53 = vadd.f32 %v2960_v0, %v2959_v48 }
 0x3b2   : > { %3609 = vpush %v2961_v53 }
 0x3b3   : > { %3611 = vpush %v3127_v22 }
 0x3e3   : > { %s3610_s4 = spop %3609 }
 0x3e4   : > { %v2963_v51 = vstv %s3610_s4  ;;  %s3612_s5 = spop %3611 }
 0x3e5   : > { %v2964_v62 = vadd.f32 %v2963_v51, %v2730_v24  ;;  %v3129_v29 = vstv %s3612_s5 }
 0x3e6   : > { %v3130_v6 = vadd.f32 %v3129_v29, %v3083_v63 }
 0x3e7   : > { %2966 = vst.msk [vmem:[%s243_s27] sm:$0x1] %vm2368_vm5, %v2964_v62 }
 0x3e8   : > { %3132 = vst.msk [vmem:[%s246_s30] sm:$0x1] %vm2368_vm5, %v3130_v6 }
 0x3e9 PF: > { %s14_s14 = sadd.s32 1, %s3728_s14   ;;  %s4810_s12 = smov %s3724_s13 }
 0x3ea   : > { %p11_p5 = scmp.ge.s32.totalorder %s14_s14, 6   ;;  %s4811_s13 = smov %s4813_s15 }
 0x3ec   :  { %13 = sbr.rel (!%p11_p5) target bundleno = 2 (0x2), region = 86 }

</bundles_post_ra>
